<compile_context>
chip_gen: v7x
topology: tpu7x:2x2x1
jax: 0.10.0
libtpu: 0.0.40
codegen_flags: <defaults>
</compile_context>

<pallas_src>
import jax
import jax.numpy as jnp
import numpy as np
from jax import lax
from jax.experimental import pallas as pl
from jax.experimental.pallas import tpu as pltpu

# ---- module hyper-parameters (default: conv path, stride=1, not deconv) ----
KERNEL_SIZE = 3   # kernel_size
NP_ = 4           # NP: number of parent capsule types
LP_ = 8           # LP: parent capsule length
LC_ = 4           # LC: child capsule length (conv in-channels)
NC_ = 4           # number of child capsule types (from the input tensor)
ROUTINGS = 3      # routings
B_ = 2
H_ = 16
W_ = 16

# TODO(synk): only the default branch (Conv2d, stride=1, 'same' padding, no bias)
# is implemented; the deconv=True (ConvTranspose2d) and simple=True (biased conv)
# branches of the PyTorch module are not translated.


# ----------------------------- Pallas kernel --------------------------------

def _make_fused_kernel(NC, NP, LP, routings):
    """Fused conv-votes + dynamic-routing kernel for one batch element."""

    def kernel(p_ref, w_ref, o_ref):
        # p_ref: (1, NC, KCP, HW)   im2col patches, H*W on the lane axis
        # w_ref: (OC=NP*LP, KCP)    flattened conv weight (zero-padded KC)
        # o_ref: (1, NP, LP, HW)    routed parent capsules
        w = w_ref[...]                                       # (OC, KCP)

        # --- capsule conv: NC small MXU matmuls; votes never leave VMEM ---
        votes_nc = [
            jnp.dot(w, p_ref[0, nc], preferred_element_type=jnp.float32)
            for nc in range(NC)                              # each (OC, HW)
        ]
        HW = votes_nc[0].shape[-1]
        # (NC, OC, HW) -> (NC, NP, LP, HW): pure sublane regrouping (free).
        votes = jnp.stack(votes_nc, axis=0).reshape(NC, NP, LP, HW)

        # --- dynamic routing (softmax over NP, squash over LP) ---
        # Exact f32 arithmetic throughout (no approx reciprocals): the routing
        # feedback loop (sims += ...) amplifies any per-step error.
        sims = jnp.zeros((NC, NP, 1, HW), jnp.float32)
        parent = jnp.zeros((NP, LP, HW), jnp.float32)
        for _ in range(routings):
            logits = sims + 0.0001              # no-op in softmax; kept for parity
            m = jnp.max(logits, axis=1, keepdims=True)       # over NP
            e = jnp.exp(logits - m)
            c = e / jnp.sum(e, axis=1, keepdims=True)        # (NC, NP, 1, HW)
            parent_before = jnp.sum(c * votes, axis=0)       # (NP, LP, HW)
            ss = jnp.sum(parent_before * parent_before,
                         axis=1, keepdims=True)              # (NP, 1, HW)
            scale = jnp.sqrt(ss) / (1.0 + ss + 0.0001)       # _squash_2 scale
            parent = scale * parent_before
            sims = sims + jnp.sum(votes * parent[None],
                                  axis=2, keepdims=True)     # (NC, NP, 1, HW)

        o_ref[0] = parent

    return kernel


# ------------------------------ wrapper --------------------------------------

def conv_caps_forward(x, w_torch_layout):
    """x: (B, NC, LC, H, W) f32; w: (NP*LP, LC, K, K) f32 (PyTorch OIHW)."""
    B, NC, LC, H, W = x.shape
    K = KERNEL_SIZE
    NP, LP = NP_, LP_
    OC = NP * LP
    HW = H * W
    pad = (K - 1) // 2                 # stride==1 => "same" padding
    KC = K * K * LC
    KCP = ((KC + 7) // 8) * 8          # pad contraction dim 36 -> 40 (sublanes)

    # ---- glue: im2col patch extraction, already in (B, NC, KC, HW) layout ----
    xp = jnp.pad(x, ((0, 0), (0, 0), (0, 0), (pad, pad), (pad, pad)))
    patches = jnp.stack(
        [xp[:, :, :, ky:ky + H, kx:kx + W]
         for ky in range(K) for kx in range(K)],
        axis=2)                                        # (B, NC, K*K, LC, H, W)
    patches = patches.reshape(B, NC, KC, HW).astype(jnp.float32)
    patches = jnp.pad(patches, ((0, 0), (0, 0), (0, KCP - KC), (0, 0)))

    # weight: OIHW -> (OC, (ky,kx,c)) to match the patch flattening order
    w_flat = jnp.transpose(w_torch_layout, (0, 2, 3, 1)).reshape(OC, KC)
    w_flat = jnp.pad(w_flat.astype(jnp.float32), ((0, 0), (0, KCP - KC)))

    kernel = _make_fused_kernel(NC, NP, LP, ROUTINGS)

    parent = pl.pallas_call(
        kernel,
        out_shape=jax.ShapeDtypeStruct((B, NP, LP, HW), jnp.float32),
        grid=(B,),
        in_specs=[pl.BlockSpec((1, NC, KCP, HW), lambda b: (b, 0, 0, 0)),
                  pl.BlockSpec((OC, KCP), lambda b: (0, 0))],
        out_specs=pl.BlockSpec((1, NP, LP, HW), lambda b: (b, 0, 0, 0)),
        compiler_params=pltpu.CompilerParams(
            dimension_semantics=("parallel",)),
    )(patches, w_flat)

    return parent.reshape(B, NP, LP, H, W)


# -------------------------- pure-JAX reference --------------------------------

def reference_forward(x, w):
    B, NC, LC, H, W = x.shape
    pad = (KERNEL_SIZE - 1) // 2
    x_bn = x.reshape(B * NC, LC, H, W)
    votes = lax.conv_general_dilated(
        x_bn, w, window_strides=(1, 1), padding=[(pad, pad), (pad, pad)],
        dimension_numbers=('NCHW', 'OIHW', 'NCHW'),
        precision=lax.Precision.HIGHEST)
    votes = votes.reshape(B, NC, NP_, LP_, H, W)
    sims = jnp.zeros((B, NC, NP_, 1, H, W), jnp.float32)
    parent = None
    for _ in range(ROUTINGS):
        c = jax.nn.softmax(sims + 0.0001, axis=2)
        parent_before = jnp.sum(c * votes, axis=1, keepdims=True)
        norm = jnp.sqrt(jnp.sum(parent_before * parent_before,
                                axis=3, keepdims=True))
        parent = norm / (1.0 + norm * norm + 0.0001) * parent_before
        sims = sims + jnp.sum(votes * parent, axis=3, keepdims=True)
    return jnp.squeeze(parent, axis=1)


# --------------------------------- main ---------------------------------------

if __name__ == "__main__":
    key = jax.random.PRNGKey(0)
    kx, kw = jax.random.split(key)
    # x: (B, NC, LC, H, W)
    x = jax.random.normal(kx, (B_, NC_, LC_, H_, W_), dtype=jnp.float32)
    # conv weight, PyTorch OIHW layout, uniform [0, 0.1] (deterministic init)
    w = jax.random.uniform(kw, (NP_ * LP_, LC_, KERNEL_SIZE, KERNEL_SIZE),
                           minval=0.0, maxval=0.1, dtype=jnp.float32)

    out = jax.jit(conv_caps_forward)(x, w)
    out = jax.block_until_ready(out)

    ref = reference_forward(x, w)
    np.testing.assert_allclose(np.asarray(out), np.asarray(ref),
                               rtol=1e-3, atol=1e-5)
    assert out.shape == (B_, NP_, LP_, H_, W_)
    print("KERNEL_OK")
</pallas_src>

<mosaic_0001>
module attributes {stable_mosaic.version = 11 : i64} {
  func.func @kernel(%arg0: i32, %arg1: memref<1x4x40x256xf32, #tpu.memory_space<vmem>>, %arg2: memref<32x40xf32, #tpu.memory_space<vmem>>, %arg3: memref<1x4x8x256xf32, #tpu.memory_space<vmem>>) attributes {dimension_semantics = [#tpu.dimension_semantics<parallel>], iteration_bounds = array<i64: 2>, scalar_prefetch = 0 : i64, scratch_operands = 0 : i64, tpu.core_type = #tpu.core_type<tc>, window_params = [{transform_indices = @transform_0, window_bounds = array<i64: 1, 4, 40, 256>}, {pipeline_mode = #tpu.pipeline_mode<synchronous>, transform_indices = @transform_1, window_bounds = array<i64: 32, 40>}, {transform_indices = @transform_2, window_bounds = array<i64: 1, 4, 8, 256>}]} {
    %c0 = arith.constant 0 : index
    %c0_0 = arith.constant 0 : index
    %0 = vector.load %arg2[%c0, %c0_0] : memref<32x40xf32, #tpu.memory_space<vmem>>, vector<32x40xf32>
    %c0_1 = arith.constant 0 : index
    %c0_2 = arith.constant 0 : index
    %c0_3 = arith.constant 0 : index
    %c0_4 = arith.constant 0 : index
    %1 = vector.load %arg1[%c0_1, %c0_2, %c0_3, %c0_4] : memref<1x4x40x256xf32, #tpu.memory_space<vmem>>, vector<1x1x40x256xf32>
    %2 = vector.shape_cast %1 : vector<1x1x40x256xf32> to vector<40x256xf32>
    %cst = arith.constant dense<0.000000e+00> : vector<32x256xf32>
    %3 = tpu.matmul %0, %2, %cst {dimension_numbers = #tpu.dot_dimension_numbers<[1], [0], [0], [1], [0, 0, 1, 1], [], []>} : vector<32x40xf32>, vector<40x256xf32>, vector<32x256xf32> -> vector<32x256xf32>
    %c0_5 = arith.constant 0 : index
    %c1 = arith.constant 1 : index
    %c0_6 = arith.constant 0 : index
    %c0_7 = arith.constant 0 : index
    %4 = vector.load %arg1[%c0_5, %c1, %c0_6, %c0_7] : memref<1x4x40x256xf32, #tpu.memory_space<vmem>>, vector<1x1x40x256xf32>
    %5 = vector.shape_cast %4 : vector<1x1x40x256xf32> to vector<40x256xf32>
    %cst_8 = arith.constant dense<0.000000e+00> : vector<32x256xf32>
    %6 = tpu.matmul %0, %5, %cst_8 {dimension_numbers = #tpu.dot_dimension_numbers<[1], [0], [0], [1], [0, 0, 1, 1], [], []>} : vector<32x40xf32>, vector<40x256xf32>, vector<32x256xf32> -> vector<32x256xf32>
    %c0_9 = arith.constant 0 : index
    %c2 = arith.constant 2 : index
    %c0_10 = arith.constant 0 : index
    %c0_11 = arith.constant 0 : index
    %7 = vector.load %arg1[%c0_9, %c2, %c0_10, %c0_11] : memref<1x4x40x256xf32, #tpu.memory_space<vmem>>, vector<1x1x40x256xf32>
    %8 = vector.shape_cast %7 : vector<1x1x40x256xf32> to vector<40x256xf32>
    %cst_12 = arith.constant dense<0.000000e+00> : vector<32x256xf32>
    %9 = tpu.matmul %0, %8, %cst_12 {dimension_numbers = #tpu.dot_dimension_numbers<[1], [0], [0], [1], [0, 0, 1, 1], [], []>} : vector<32x40xf32>, vector<40x256xf32>, vector<32x256xf32> -> vector<32x256xf32>
    %c0_13 = arith.constant 0 : index
    %c3 = arith.constant 3 : index
    %c0_14 = arith.constant 0 : index
    %c0_15 = arith.constant 0 : index
    %10 = vector.load %arg1[%c0_13, %c3, %c0_14, %c0_15] : memref<1x4x40x256xf32, #tpu.memory_space<vmem>>, vector<1x1x40x256xf32>
    %11 = vector.shape_cast %10 : vector<1x1x40x256xf32> to vector<40x256xf32>
    %cst_16 = arith.constant dense<0.000000e+00> : vector<32x256xf32>
    %12 = tpu.matmul %0, %11, %cst_16 {dimension_numbers = #tpu.dot_dimension_numbers<[1], [0], [0], [1], [0, 0, 1, 1], [], []>} : vector<32x40xf32>, vector<40x256xf32>, vector<32x256xf32> -> vector<32x256xf32>
    %13 = vector.shape_cast %3 : vector<32x256xf32> to vector<1x32x256xf32>
    %14 = vector.shape_cast %6 : vector<32x256xf32> to vector<1x32x256xf32>
    %15 = vector.shape_cast %9 : vector<32x256xf32> to vector<1x32x256xf32>
    %16 = vector.shape_cast %12 : vector<32x256xf32> to vector<1x32x256xf32>
    %17 = tpu.concatenate %13, %14, %15, %16 in 0 : vector<1x32x256xf32>, vector<1x32x256xf32>, vector<1x32x256xf32>, vector<1x32x256xf32> -> vector<4x32x256xf32>
    %18 = vector.shape_cast %17 : vector<4x32x256xf32> to vector<4x4x8x256xf32>
    %cst_17 = arith.constant 0.000000e+00 : f32
    %19 = vector.broadcast %cst_17 : f32 to vector<4x4x1x256xf32>
    %cst_18 = arith.constant 9.99999974E-5 : f32
    %20 = vector.broadcast %cst_18 : f32 to vector<4x4x1x256xf32>
    %21 = arith.addf %19, %20 : vector<4x4x1x256xf32>
    %cst_19 = arith.constant dense<0xFF800000> : vector<4x1x256xf32>
    %22 = vector.multi_reduction <maximumf>, %21, %cst_19 [1] : vector<4x4x1x256xf32> to vector<4x1x256xf32>
    %23 = vector.shape_cast %22 : vector<4x1x256xf32> to vector<4x1x1x256xf32>
    %24 = vector.broadcast %23 : vector<4x1x1x256xf32> to vector<4x4x1x256xf32>
    %25 = arith.subf %21, %24 : vector<4x4x1x256xf32>
    %26 = math.exp %25 : vector<4x4x1x256xf32>
    %cst_20 = arith.constant dense<0.000000e+00> : vector<4x1x256xf32>
    %27 = vector.multi_reduction <add>, %26, %cst_20 [1] : vector<4x4x1x256xf32> to vector<4x1x256xf32>
    %28 = vector.shape_cast %27 : vector<4x1x256xf32> to vector<4x1x1x256xf32>
    %29 = vector.broadcast %28 : vector<4x1x1x256xf32> to vector<4x4x1x256xf32>
    %30 = arith.divf %26, %29 : vector<4x4x1x256xf32>
    %31 = vector.broadcast %30 : vector<4x4x1x256xf32> to vector<4x4x8x256xf32>
    %32 = arith.mulf %31, %18 : vector<4x4x8x256xf32>
    %cst_21 = arith.constant dense<0.000000e+00> : vector<4x8x256xf32>
    %33 = vector.multi_reduction <add>, %32, %cst_21 [0] : vector<4x4x8x256xf32> to vector<4x8x256xf32>
    %34 = arith.mulf %33, %33 : vector<4x8x256xf32>
    %cst_22 = arith.constant dense<0.000000e+00> : vector<4x256xf32>
    %35 = vector.multi_reduction <add>, %34, %cst_22 [1] : vector<4x8x256xf32> to vector<4x256xf32>
    %36 = vector.shape_cast %35 : vector<4x256xf32> to vector<4x1x256xf32>
    %37 = math.sqrt %36 : vector<4x1x256xf32>
    %cst_23 = arith.constant 1.000000e+00 : f32
    %38 = vector.broadcast %cst_23 : f32 to vector<4x1x256xf32>
    %39 = arith.addf %38, %36 : vector<4x1x256xf32>
    %cst_24 = arith.constant 9.99999974E-5 : f32
    %40 = vector.broadcast %cst_24 : f32 to vector<4x1x256xf32>
    %41 = arith.addf %39, %40 : vector<4x1x256xf32>
    %42 = arith.divf %37, %41 : vector<4x1x256xf32>
    %43 = vector.broadcast %42 : vector<4x1x256xf32> to vector<4x8x256xf32>
    %44 = arith.mulf %43, %33 : vector<4x8x256xf32>
    %45 = vector.shape_cast %44 : vector<4x8x256xf32> to vector<1x4x8x256xf32>
    %46 = vector.broadcast %45 : vector<1x4x8x256xf32> to vector<4x4x8x256xf32>
    %47 = arith.mulf %18, %46 : vector<4x4x8x256xf32>
    %cst_25 = arith.constant dense<0.000000e+00> : vector<4x4x256xf32>
    %48 = vector.multi_reduction <add>, %47, %cst_25 [2] : vector<4x4x8x256xf32> to vector<4x4x256xf32>
    %49 = vector.shape_cast %48 : vector<4x4x256xf32> to vector<4x4x1x256xf32>
    %50 = arith.addf %19, %49 : vector<4x4x1x256xf32>
    %cst_26 = arith.constant 9.99999974E-5 : f32
    %51 = vector.broadcast %cst_26 : f32 to vector<4x4x1x256xf32>
    %52 = arith.addf %50, %51 : vector<4x4x1x256xf32>
    %cst_27 = arith.constant dense<0xFF800000> : vector<4x1x256xf32>
    %53 = vector.multi_reduction <maximumf>, %52, %cst_27 [1] : vector<4x4x1x256xf32> to vector<4x1x256xf32>
    %54 = vector.shape_cast %53 : vector<4x1x256xf32> to vector<4x1x1x256xf32>
    %55 = vector.broadcast %54 : vector<4x1x1x256xf32> to vector<4x4x1x256xf32>
    %56 = arith.subf %52, %55 : vector<4x4x1x256xf32>
    %57 = math.exp %56 : vector<4x4x1x256xf32>
    %cst_28 = arith.constant dense<0.000000e+00> : vector<4x1x256xf32>
    %58 = vector.multi_reduction <add>, %57, %cst_28 [1] : vector<4x4x1x256xf32> to vector<4x1x256xf32>
    %59 = vector.shape_cast %58 : vector<4x1x256xf32> to vector<4x1x1x256xf32>
    %60 = vector.broadcast %59 : vector<4x1x1x256xf32> to vector<4x4x1x256xf32>
    %61 = arith.divf %57, %60 : vector<4x4x1x256xf32>
    %62 = vector.broadcast %61 : vector<4x4x1x256xf32> to vector<4x4x8x256xf32>
    %63 = arith.mulf %62, %18 : vector<4x4x8x256xf32>
    %cst_29 = arith.constant dense<0.000000e+00> : vector<4x8x256xf32>
    %64 = vector.multi_reduction <add>, %63, %cst_29 [0] : vector<4x4x8x256xf32> to vector<4x8x256xf32>
    %65 = arith.mulf %64, %64 : vector<4x8x256xf32>
    %cst_30 = arith.constant dense<0.000000e+00> : vector<4x256xf32>
    %66 = vector.multi_reduction <add>, %65, %cst_30 [1] : vector<4x8x256xf32> to vector<4x256xf32>
    %67 = vector.shape_cast %66 : vector<4x256xf32> to vector<4x1x256xf32>
    %68 = math.sqrt %67 : vector<4x1x256xf32>
    %cst_31 = arith.constant 1.000000e+00 : f32
    %69 = vector.broadcast %cst_31 : f32 to vector<4x1x256xf32>
    %70 = arith.addf %69, %67 : vector<4x1x256xf32>
    %cst_32 = arith.constant 9.99999974E-5 : f32
    %71 = vector.broadcast %cst_32 : f32 to vector<4x1x256xf32>
    %72 = arith.addf %70, %71 : vector<4x1x256xf32>
    %73 = arith.divf %68, %72 : vector<4x1x256xf32>
    %74 = vector.broadcast %73 : vector<4x1x256xf32> to vector<4x8x256xf32>
    %75 = arith.mulf %74, %64 : vector<4x8x256xf32>
    %76 = vector.shape_cast %75 : vector<4x8x256xf32> to vector<1x4x8x256xf32>
    %77 = vector.broadcast %76 : vector<1x4x8x256xf32> to vector<4x4x8x256xf32>
    %78 = arith.mulf %18, %77 : vector<4x4x8x256xf32>
    %cst_33 = arith.constant dense<0.000000e+00> : vector<4x4x256xf32>
    %79 = vector.multi_reduction <add>, %78, %cst_33 [2] : vector<4x4x8x256xf32> to vector<4x4x256xf32>
    %80 = vector.shape_cast %79 : vector<4x4x256xf32> to vector<4x4x1x256xf32>
    %81 = arith.addf %50, %80 : vector<4x4x1x256xf32>
    %cst_34 = arith.constant 9.99999974E-5 : f32
    %82 = vector.broadcast %cst_34 : f32 to vector<4x4x1x256xf32>
    %83 = arith.addf %81, %82 : vector<4x4x1x256xf32>
    %cst_35 = arith.constant dense<0xFF800000> : vector<4x1x256xf32>
    %84 = vector.multi_reduction <maximumf>, %83, %cst_35 [1] : vector<4x4x1x256xf32> to vector<4x1x256xf32>
    %85 = vector.shape_cast %84 : vector<4x1x256xf32> to vector<4x1x1x256xf32>
    %86 = vector.broadcast %85 : vector<4x1x1x256xf32> to vector<4x4x1x256xf32>
    %87 = arith.subf %83, %86 : vector<4x4x1x256xf32>
    %88 = math.exp %87 : vector<4x4x1x256xf32>
    %cst_36 = arith.constant dense<0.000000e+00> : vector<4x1x256xf32>
    %89 = vector.multi_reduction <add>, %88, %cst_36 [1] : vector<4x4x1x256xf32> to vector<4x1x256xf32>
    %90 = vector.shape_cast %89 : vector<4x1x256xf32> to vector<4x1x1x256xf32>
    %91 = vector.broadcast %90 : vector<4x1x1x256xf32> to vector<4x4x1x256xf32>
    %92 = arith.divf %88, %91 : vector<4x4x1x256xf32>
    %93 = vector.broadcast %92 : vector<4x4x1x256xf32> to vector<4x4x8x256xf32>
    %94 = arith.mulf %93, %18 : vector<4x4x8x256xf32>
    %cst_37 = arith.constant dense<0.000000e+00> : vector<4x8x256xf32>
    %95 = vector.multi_reduction <add>, %94, %cst_37 [0] : vector<4x4x8x256xf32> to vector<4x8x256xf32>
    %96 = arith.mulf %95, %95 : vector<4x8x256xf32>
    %cst_38 = arith.constant dense<0.000000e+00> : vector<4x256xf32>
    %97 = vector.multi_reduction <add>, %96, %cst_38 [1] : vector<4x8x256xf32> to vector<4x256xf32>
    %98 = vector.shape_cast %97 : vector<4x256xf32> to vector<4x1x256xf32>
    %99 = math.sqrt %98 : vector<4x1x256xf32>
    %cst_39 = arith.constant 1.000000e+00 : f32
    %100 = vector.broadcast %cst_39 : f32 to vector<4x1x256xf32>
    %101 = arith.addf %100, %98 : vector<4x1x256xf32>
    %cst_40 = arith.constant 9.99999974E-5 : f32
    %102 = vector.broadcast %cst_40 : f32 to vector<4x1x256xf32>
    %103 = arith.addf %101, %102 : vector<4x1x256xf32>
    %104 = arith.divf %99, %103 : vector<4x1x256xf32>
    %105 = vector.broadcast %104 : vector<4x1x256xf32> to vector<4x8x256xf32>
    %106 = arith.mulf %105, %95 : vector<4x8x256xf32>
    %c0_41 = arith.constant 0 : index
    %c0_42 = arith.constant 0 : index
    %c0_43 = arith.constant 0 : index
    %c0_44 = arith.constant 0 : index
    %107 = vector.load %arg3[%c0_41, %c0_42, %c0_43, %c0_44] : memref<1x4x8x256xf32, #tpu.memory_space<vmem>>, vector<1x4x8x256xf32>
    %108 = vector.shape_cast %107 : vector<1x4x8x256xf32> to vector<4x8x256xf32>
    %109 = vector.shape_cast %106 : vector<4x8x256xf32> to vector<1x4x8x256xf32>
    tpu.vector_store %arg3[%c0_41, %c0_42, %c0_43, %c0_44], %109 {strides = array<i32>} : memref<1x4x8x256xf32, #tpu.memory_space<vmem>>, vector<1x4x8x256xf32>,
    return
  }
  func.func @transform_0(%arg0: i32) -> (i32, i32, i32, i32) {
    %c0_i32 = arith.constant 0 : i32
    %c0_i32_0 = arith.constant 0 : i32
    %c0_i32_1 = arith.constant 0 : i32
    %c0_i32_2 = arith.constant 0 : i32
    return %arg0, %c0_i32, %c0_i32_0, %c0_i32_1 : i32, i32, i32, i32
  }
  func.func @transform_1(%arg0: i32) -> (i32, i32) {
    %c0_i32 = arith.constant 0 : i32
    %c0_i32_0 = arith.constant 0 : i32
    %c0_i32_1 = arith.constant 0 : i32
    return %c0_i32, %c0_i32_0 : i32, i32
  }
  func.func @transform_2(%arg0: i32) -> (i32, i32, i32, i32) {
    %c0_i32 = arith.constant 0 : i32
    %c0_i32_0 = arith.constant 0 : i32
    %c0_i32_1 = arith.constant 0 : i32
    %c0_i32_2 = arith.constant 0 : i32
    return %arg0, %c0_i32, %c0_i32_0, %c0_i32_1 : i32, i32, i32, i32
  }
}

</mosaic_0001>

<bundles_post_ra>
// kernel: conv_caps_forward.1
= control target key start
LH: loop header
LB: loop body
LE: loop exit
PB: predicated region body
PF: predicated region fallthrough
CT: control target
= control target key end

     0   :  { %s2570_s9 = smov 0   ;;  %s3960_s0 = inlined_call_operand.vmem [shape: f32[2,4,40,256], index: 0, kind: input, shape index: {}]   ;;  %s3961_s1 = inlined_call_operand.vmem [shape: f32[32,40], index: 1, kind: input, shape index: {}]   ;;  %s3962_s2 = inlined_call_operand.vmem [shape: f32[2,4,8,256], index: 2, kind: output, shape index: {}]  }
   0x1 LB: > { %s2191_s10 = sadd.s32 4294967295, %s2552_s9   ;;  %p2195_p0 = scmp.ge.s32.totalorder %s2552_s9, 1  ;;  %s2552_s9 = sphi %s2570_s9, %s12_s9  }
   0x2   : > { %p112_p1 = scmp.lt.s32.totalorder %s2552_s9, 3 }
   0x4   : > { %p113_p2 = pnand %p2195_p0, %p112_p1 }
   0x6   : > { %116 = sbr.rel (%p113_p2) target bundleno = 707 (0x2c3), region = 28 }
   0xd   : > { %p134_p3 = scmp.lt.s32.totalorder %s2191_s10, 1  ;;  %v2554_v0 = vmov 0.0   ;;  %v144_v34 = vld [vmem:[%s3961_s1] sm:$0xff]  ;;  %vm158_vm0 = vcmask 326656   ;;  %v145_v48 = vld [vmem:[%s3961_s1 + $0x8] sm:$0xff]  ;;  %v146_v55 = vld [vmem:[%s3961_s1 + $0x10] sm:$0xff] }
   0xe   : > { %235 = vmatprep.mubr.f32.mxu0 %v2554_v0  ;;  %335 = vmatprep.mubr.f32.mxu1 %v2554_v0  ;;  %v147_v59 = vld [vmem:[%s3961_s1 + $0x18] sm:$0xff] }
   0xf   : > { %s4207_s10 = smov (!%p134_p3, %s2191_s10), 1 }
  0x10   : > { %s2280_s11 = smul.u32 320, %s4207_s10  ;;  %s2247_s23 = sshll.u32 %s4207_s10, 6 }
  0x11   : > { %s3874_s26 = scalar_lea.vmem %s3962_s2, %s2247_s23 }
  0x12   : > { %s2586_s14 = scalar_lea.vmem %s3960_s0, %s2280_s11 }
  0x13   : > { %v149_v1 = vld [vmem:[%s2586_s14 + $0x8] sm:$0xff]  ;;  %v151_v2 = vld [vmem:[%s2586_s14 + $0x18] sm:$0xff]  ;;  %v148_v6 = vld [vmem:[%s2586_s14] sm:$0xff] }
  0x14   : > { %v2204_v3 = vld [vmem:[%s2586_s14 + $0x58] sm:$0xff]  ;;  %v2248_v4 = vpack.c.bf16 %v151_v2, %v149_v1  ;;  %v2206_v5 = vld [vmem:[%s2586_s14 + $0x68] sm:$0xff]  ;;  %v150_v7 = vld [vmem:[%s2586_s14 + $0x10] sm:$0xff] }
  0x15   : > { %v2256_v8 = vpack.c.bf16 %v2206_v5, %v2204_v3  ;;  %v2250_v9 = vpack.c.bf16 %v150_v7, %v148_v6  ;;  %v2203_v10 = vld [vmem:[%s2586_s14 + $0x50] sm:$0xff]  ;;  %v2205_v11 = vld [vmem:[%s2586_s14 + $0x60] sm:$0xff]  ;;  %v153_v12 = vld [vmem:[%s2586_s14 + $0x28] sm:$0xff] }
  0x16   : > { %2249 = vmatprep.subr.bf16.mxu0 %v2248_v4  ;;  %v2258_v13 = vpack.c.bf16 %v2205_v11, %v2203_v10  ;;  %v155_v14 = vld [vmem:[%s2586_s14 + $0x38] sm:$0xff]  ;;  %v2210_v16 = vld [vmem:[%s2586_s14 + $0x88] sm:$0xff]  ;;  %v152_v19 = vld [vmem:[%s2586_s14 + $0x20] sm:$0xff] }
  0x17   : > { %v2208_v15 = vld [vmem:[%s2586_s14 + $0x78] sm:$0xff]  ;;  %2257 = vmatprep.subr.bf16.mxu1 %v2256_v8  ;;  %2251 = vmatpush1.bf16.msra.mxu0 %v2250_v9  ;;  %v2252_v17 = vpack.c.bf16 %v155_v14, %v153_v12  ;;  %v154_v20 = vld [vmem:[%s2586_s14 + $0x30] sm:$0xff]  ;;  %v2209_v23 = vld [vmem:[%s2586_s14 + $0x80] sm:$0xff] }
  0x18   : > { %v2260_v18 = vpack.c.bf16 %v2210_v16, %v2208_v15  ;;  %v2207_v21 = vld [vmem:[%s2586_s14 + $0x70] sm:$0xff]  ;;  %2259 = vmatpush1.bf16.msra.mxu1 %v2258_v13  ;;  %v2254_v22 = vpack.c.bf16 %v154_v20, %v152_v19  ;;  %v157_v25 = vld [vmem:[%s2586_s14 + $0x48] sm:$0xff]  ;;  %v2212_v26 = vld [vmem:[%s2586_s14 + $0x98] sm:$0xff] }
  0x19   : > { %2253 = vmatprep.subr.bf16.mxu0 %v2252_v17  ;;  %v2262_v24 = vpack.c.bf16 %v2209_v23, %v2207_v21  ;;  %v2218_v27 = vld [vmem:[%s2586_s14 + $0xa8] sm:$0xff]  ;;  %v2220_v28 = vld [vmem:[%s2586_s14 + $0xb8] sm:$0xff]  ;;  %v2217_v29 = vld [vmem:[%s2586_s14 + $0xa0] sm:$0xff] }
  0x1a   : > { %2261 = vmatprep.subr.bf16.mxu1 %v2260_v18  ;;  %v2219_v30 = vld [vmem:[%s2586_s14 + $0xb0] sm:$0xff]  ;;  %v2232_v31 = vld [vmem:[%s2586_s14 + $0xf8] sm:$0xff]  ;;  %v2234_v32 = vld [vmem:[%s2586_s14 + $0x108] sm:$0xff]  ;;  %v2264_v36 = vpack.c.bf16 %v2220_v28, %v2218_v27 }
  0x1b   : > { %2255 = vmatpush1.bf16.msra.mxu0 %v2254_v22  ;;  %v156_v33 = vld [vmem:[%s2586_s14 + $0x40] sm:$0xff]  ;;  %v2211_v35 = vld [vmem:[%s2586_s14 + $0x90] sm:$0xff]  ;;  %v2266_v39 = vpack.c.bf16 %v2219_v30, %v2217_v29  ;;  %v2272_v40 = vpack.c.bf16 %v2234_v32, %v2232_v31  ;;  %v2222_v41 = vld [vmem:[%s2586_s14 + $0xc8] sm:$0xff] }
  0x1c   : > { %2263 = vmatpush1.bf16.msra.mxu1 %v2262_v24  ;;  %179 = vmatprep.subr.mxu0 %v157_v25  ;;  %v2231_v37 = vld [vmem:[%s2586_s14 + $0xf0] sm:$0xff]  ;;  %v2233_v38 = vld [vmem:[%s2586_s14 + $0x100] sm:$0xff]  ;;  %v2224_v42 = vld [vmem:[%s2586_s14 + $0xd8] sm:$0xff] }
  0x1d   : > { %279 = vmatprep.subr.mxu1 %v2212_v26  ;;  %v2221_v43 = vld [vmem:[%s2586_s14 + $0xc0] sm:$0xff]  ;;  %v2274_v44 = vpack.c.bf16 %v2233_v38, %v2231_v37  ;;  %v2223_v45 = vld [vmem:[%s2586_s14 + $0xd0] sm:$0xff]  ;;  %v2236_v46 = vld [vmem:[%s2586_s14 + $0x118] sm:$0xff]  ;;  %v2268_v49 = vpack.c.bf16 %v2224_v42, %v2222_v41 }
  0x1e   : > { %v2238_v47 = vld [vmem:[%s2586_s14 + $0x128] sm:$0xff]  ;;  %v2235_v50 = vld [vmem:[%s2586_s14 + $0x110] sm:$0xff]  ;;  %v2237_v51 = vld [vmem:[%s2586_s14 + $0x120] sm:$0xff]  ;;  %v2270_v52 = vpack.c.bf16 %v2223_v45, %v2221_v43 }
  0x1f   : > { %180 = vmatpush1.msra.mxu0 %v156_v33  ;;  %v2276_v53 = vpack.c.bf16 %v2238_v47, %v2236_v46  ;;  %v2278_v54 = vpack.c.bf16 %v2237_v51, %v2235_v50  ;;  %v2226_v56 = vld [vmem:[%s2586_s14 + $0xe8] sm:$0xff]  ;;  %v2225_v57 = vld [vmem:[%s2586_s14 + $0xe0] sm:$0xff]  ;;  %v2240_v58 = vld [vmem:[%s2586_s14 + $0x138] sm:$0xff] }
  0x20   : > { %280 = vmatpush1.msra.mxu1 %v2211_v35  ;;  %2199 = vmatmul.mubr.msk.f32.vlgmr.msra.gmra.mrb[0].mxu0 %vm158_vm0, %v144_v34  ;;  %v2239_v60 = vld [vmem:[%s2586_s14 + $0x130] sm:$0xff] }
  0x21   : > { %2213 = vmatmul.mubr.msk.f32.vlgmr.msra.gmra.mrb[0].mxu1 %vm158_vm0, %v144_v34  ;;  %2265 = vmatprep.subr.bf16.mxu0 %v2264_v36 }
  0x22   : > { %2267 = vmatpush1.bf16.msra.mxu0 %v2266_v39  ;;  %2273 = vmatprep.subr.bf16.mxu1 %v2272_v40 }
  0x23   : > { %241 = vmatprep.mubr.f32.mxu0 %v2554_v0  ;;  %341 = vmatprep.mubr.f32.mxu1 %v2554_v0 }
  0x24   : > { %2275 = vmatpush1.bf16.msra.mxu1 %v2274_v44  ;;  %2200 = vmatmul.mubr.msk.f32.gmra.mrb[2].mxu0 %vm158_vm0, %v145_v48 }
  0x25   : > { %2214 = vmatmul.mubr.msk.f32.gmra.mrb[2].mxu1 %vm158_vm0, %v145_v48  ;;  %2269 = vmatprep.subr.bf16.mxu0 %v2268_v49 }
  0x26   : > { %247 = vmatprep.mubr.f32.mxu0 %v2554_v0  ;;  %347 = vmatprep.mubr.f32.mxu1 %v2554_v0 }
  0x27   : > { %2271 = vmatpush1.bf16.msra.mxu0 %v2270_v52  ;;  %2277 = vmatprep.subr.bf16.mxu1 %v2276_v53 }
  0x28   : > { %2201 = vmatmul.mubr.msk.f32.gmra.mrb[4].mxu0 %vm158_vm0, %v146_v55  ;;  %2279 = vmatpush1.bf16.msra.mxu1 %v2278_v54 }
  0x29   : > { %2215 = vmatmul.mubr.msk.f32.gmra.mrb[4].mxu1 %vm158_vm0, %v146_v55  ;;  %253 = vmatprep.mubr.f32.mxu0 %v2554_v0 }
  0x2a   : > { %353 = vmatprep.mubr.f32.mxu1 %v2554_v0  ;;  %379 = vmatprep.subr.mxu0 %v2226_v56 }
  0x2b   : > { %380 = vmatpush1.msra.mxu0 %v2225_v57  ;;  %479 = vmatprep.subr.mxu1 %v2240_v58 }
  0x2c   : > { %2202 = vmatmul.mubr.msk.f32.gmra.mrb[6].mxu0 %vm158_vm0, %v147_v59  ;;  %480 = vmatpush1.msra.mxu1 %v2239_v60 }
  0x2d   : > { %2216 = vmatmul.mubr.msk.f32.gmra.mrb[6].mxu1 %vm158_vm0, %v147_v59  ;;  %435 = vmatprep.mubr.f32.mxu0 %v2554_v0 }
  0x2e   : > { %535 = vmatprep.mubr.f32.mxu1 %v2554_v0 }
  0x30   : > { %2227 = vmatmul.mubr.msk.f32.vlgmr.msra.gmra.mrb[8].mxu0 %vm158_vm0, %v144_v34 }
  0x31   : > { %2241 = vmatmul.mubr.msk.f32.vlgmr.msra.gmra.mrb[8].mxu1 %vm158_vm0, %v144_v34  ;;  %441 = vmatprep.mubr.f32.mxu0 %v2554_v0 }
  0x32   : > { %541 = vmatprep.mubr.f32.mxu1 %v2554_v0 }
  0x34   : > { %2228 = vmatmul.mubr.msk.f32.gmra.mrb[10].mxu0 %vm158_vm0, %v145_v48 }
  0x35   : > { %2242 = vmatmul.mubr.msk.f32.gmra.mrb[10].mxu1 %vm158_vm0, %v145_v48  ;;  %447 = vmatprep.mubr.f32.mxu0 %v2554_v0 }
  0x36   : > { %547 = vmatprep.mubr.f32.mxu1 %v2554_v0 }
  0x38   : > { %2229 = vmatmul.mubr.msk.f32.gmra.mrb[12].mxu0 %vm158_vm0, %v146_v55 }
  0x39   : > { %2243 = vmatmul.mubr.msk.f32.gmra.mrb[12].mxu1 %vm158_vm0, %v146_v55  ;;  %453 = vmatprep.mubr.f32.mxu0 %v2554_v0 }
  0x3a   : > { %553 = vmatprep.mubr.f32.mxu1 %v2554_v0 }
  0x3c   : > { %2230 = vmatmul.mubr.msk.f32.gmra.mrb[14].mxu0 %vm158_vm0, %v147_v59 }
  0x3d   : > { %2244 = vmatmul.mubr.msk.f32.gmra.mrb[14].mxu1 %vm158_vm0, %v147_v59 }
  0xf3   : > { %v2670_v61 = vpop.f32.mrb[0].mxu0 }
  0xf4   : > { %v560_v62 = vmul.f32 0.25, %v2670_v61  ;;  %v2673_v63 = vpop.f32.mrb[0].mxu1  ;;  %v2675_v1 = vpop.f32.mrb[1].mxu0 }
  0xf5   : > { %4058 = vst [vmem:[#allocation2_spill] sm:$0xff] %v2673_v63  ;;  %4059 = vst [vmem:[#allocation3_spill] sm:$0xff] %v2675_v1  ;;  %v568_v2 = vmul.f32 0.25, %v2673_v63  ;;  %v561_v3 = vmul.f32 0.25, %v2675_v1  ;;  %v2679_v4 = vpop.f32.mrb[1].mxu1 }
  0xf6   : > { %4060 = vst [vmem:[#allocation4_spill] sm:$0xff] %v2679_v4  ;;  %v569_v0 = vmul.f32 0.25, %v2679_v4 }
  0xf7   : > { %v592_v5 = vadd.f32 %v568_v2, %v560_v62  ;;  %v2682_v6 = vpop.f32.mrb[2].mxu0 }
  0xf8   : > { %v595_v7 = vadd.f32 %v569_v0, %v561_v3  ;;  %v562_v8 = vmul.f32 0.25, %v2682_v6  ;;  %v2685_v9 = vpop.f32.mrb[2].mxu1  ;;  %v2687_v10 = vpop.f32.mrb[3].mxu0 }
  0xf9   : > { %4061 = vst [vmem:[#allocation5_spill] sm:$0xff] %v2685_v9  ;;  %4062 = vst [vmem:[#allocation6_spill] sm:$0xff] %v2687_v10  ;;  %v570_v11 = vmul.f32 0.25, %v2685_v9  ;;  %v563_v12 = vmul.f32 0.25, %v2687_v10  ;;  %v2691_v13 = vpop.f32.mrb[3].mxu1 }
  0xfa   : > { %4063 = vst [vmem:[#allocation7_spill] sm:$0xff] %v2691_v13  ;;  %v571_v14 = vmul.f32 0.25, %v2691_v13 }
  0xfb   : > { %v598_v15 = vadd.f32 %v570_v11, %v562_v8  ;;  %v2694_v16 = vpop.f32.mrb[4].mxu0 }
  0xfc   : > { %v601_v17 = vadd.f32 %v571_v14, %v563_v12  ;;  %v564_v18 = vmul.f32 0.25, %v2694_v16  ;;  %v2697_v19 = vpop.f32.mrb[4].mxu1  ;;  %v2699_v20 = vpop.f32.mrb[5].mxu0 }
  0xfd   : > { %4064 = vst [vmem:[#allocation8_spill] sm:$0xff] %v2699_v20  ;;  %v572_v21 = vmul.f32 0.25, %v2697_v19  ;;  %v565_v22 = vmul.f32 0.25, %v2699_v20  ;;  %v2703_v23 = vpop.f32.mrb[5].mxu1 }
  0xfe   : > { %4065 = vst [vmem:[#allocation9_spill] sm:$0xff] %v2703_v23  ;;  %v573_v24 = vmul.f32 0.25, %v2703_v23 }
  0xff   : > { %v604_v25 = vadd.f32 %v572_v21, %v564_v18  ;;  %v2706_v26 = vpop.f32.mrb[6].mxu0 }
 0x100   : > { %v607_v27 = vadd.f32 %v573_v24, %v565_v22  ;;  %v566_v28 = vmul.f32 0.25, %v2706_v26  ;;  %v2709_v29 = vpop.f32.mrb[6].mxu1  ;;  %v2711_v30 = vpop.f32.mrb[7].mxu0 }
 0x101   : > { %4066 = vst [vmem:[#allocation10_spill] sm:$0xff] %v2709_v29  ;;  %4067 = vst [vmem:[#allocation11_spill] sm:$0xff] %v2711_v30  ;;  %v574_v31 = vmul.f32 0.25, %v2709_v29  ;;  %v567_v32 = vmul.f32 0.25, %v2711_v30  ;;  %v2715_v33 = vpop.f32.mrb[7].mxu1 }
 0x102   : > { %4068 = vst [vmem:[#allocation12_spill] sm:$0xff] %v2715_v33  ;;  %v575_v34 = vmul.f32 0.25, %v2715_v33 }
 0x103   : > { %v610_v35 = vadd.f32 %v574_v31, %v566_v28  ;;  %v2718_v36 = vpop.f32.mrb[8].mxu0 }
 0x104   : > { %4069 = vst [vmem:[#allocation13_spill] sm:$0xff] %v2718_v36  ;;  %v576_v37 = vmul.f32 0.25, %v2718_v36  ;;  %v2721_v38 = vpop.f32.mrb[9].mxu0  ;;  %v2723_v39 = vpop.f32.mrb[8].mxu1  ;;  %v613_v40 = vadd.f32 %v575_v34, %v567_v32 }
 0x105   : > { %4070 = vst [vmem:[#allocation14_spill] sm:$0xff] %v2721_v38  ;;  %4071 = vst [vmem:[#allocation15_spill] sm:$0xff] %v2723_v39  ;;  %v577_v41 = vmul.f32 0.25, %v2721_v38  ;;  %v584_v42 = vmul.f32 0.25, %v2723_v39  ;;  %v2727_v43 = vpop.f32.mrb[9].mxu1 }
 0x106   : > { %4072 = vst [vmem:[#allocation16_spill] sm:$0xff] %v2727_v43  ;;  %v593_v44 = vadd.f32 %v592_v5, %v576_v37  ;;  %v585_v45 = vmul.f32 0.25, %v2727_v43 }
 0x107   : > { %v596_v46 = vadd.f32 %v595_v7, %v577_v41  ;;  %v2730_v47 = vpop.f32.mrb[10].mxu0 }
 0x108   : > { %4073 = vst [vmem:[#allocation17_spill] sm:$0xff] %v2730_v47  ;;  %v2732_v48 = vadd.f32 %v593_v44, %v584_v42  ;;  %v578_v49 = vmul.f32 0.25, %v2730_v47  ;;  %v2735_v50 = vpop.f32.mrb[11].mxu0  ;;  %v2737_v51 = vpop.f32.mrb[10].mxu1 }
 0x109   : > { %4074 = vst [vmem:[#allocation18_spill] sm:$0xff] %v2735_v50  ;;  %4075 = vst [vmem:[#allocation19_spill] sm:$0xff] %v2737_v51  ;;  %v2739_v52 = vadd.f32 %v596_v46, %v585_v45  ;;  %v579_v53 = vmul.f32 0.25, %v2735_v50  ;;  %v586_v54 = vmul.f32 0.25, %v2737_v51  ;;  %v2743_v55 = vpop.f32.mrb[11].mxu1 }
 0x10a   : > { %4076 = vst [vmem:[#allocation20_spill] sm:$0xff] %v2743_v55  ;;  %v616_v56 = vmul.f32 %v2732_v48, %v2732_v48  ;;  %v599_v57 = vadd.f32 %v598_v15, %v578_v49  ;;  %v587_v58 = vmul.f32 0.25, %v2743_v55 }
 0x10b   : > { %v617_v59 = vmul.f32 %v2739_v52, %v2739_v52  ;;  %v602_v60 = vadd.f32 %v601_v17, %v579_v53  ;;  %v2750_v62 = vpop.f32.mrb[12].mxu0 }
 0x10c   : > { %4077 = vst [vmem:[#allocation21_spill] sm:$0xff] %v2750_v62  ;;  %v624_v2 = vrot.slane %v616_v56, 4  ;;  %v2752_v3 = vadd.f32 %v599_v57, %v586_v54  ;;  %v580_v0 = vmul.f32 0.25, %v2750_v62  ;;  %v2755_v5 = vpop.f32.mrb[13].mxu0  ;;  %v2757_v7 = vpop.f32.mrb[12].mxu1 }
 0x10d   : > { %4078 = vst [vmem:[#allocation22_spill] sm:$0xff] %v2755_v5  ;;  %4079 = vst [vmem:[#allocation23_spill] sm:$0xff] %v2757_v7  ;;  %v630_v8 = vrot.slane %v617_v59, 4  ;;  %v2759_v11 = vadd.f32 %v602_v60, %v587_v58  ;;  %v581_v12 = vmul.f32 0.25, %v2755_v5  ;;  %v588_v14 = vmul.f32 0.25, %v2757_v7  ;;  %v2763_v15 = vpop.f32.mrb[13].mxu1 }
 0x10e   : > { %4080 = vst [vmem:[#allocation24_spill] sm:$0xff] %v2763_v15  ;;  %v625_v17 = vadd.f32 %v624_v2, %v616_v56  ;;  %v618_v18 = vmul.f32 %v2752_v3, %v2752_v3  ;;  %v605_v21 = vadd.f32 %v604_v25, %v580_v0  ;;  %v589_v22 = vmul.f32 0.25, %v2763_v15 }
 0x10f   : > { %v631_v24 = vadd.f32 %v630_v8, %v617_v59  ;;  %v619_v28 = vmul.f32 %v2759_v11, %v2759_v11  ;;  %v608_v31 = vadd.f32 %v607_v27, %v581_v12  ;;  %v2770_v32 = vpop.f32.mrb[14].mxu0 }
 0x110   : > { %4081 = vst [vmem:[#allocation25_spill] sm:$0xff] %v2770_v32  ;;  %v626_v34 = vrot.slane %v625_v17, 2  ;;  %v636_v37 = vrot.slane %v618_v18, 4  ;;  %v2772_v41 = vadd.f32 %v605_v21, %v588_v14  ;;  %v582_v42 = vmul.f32 0.25, %v2770_v32  ;;  %v2775_v44 = vpop.f32.mrb[15].mxu0  ;;  %v2777_v45 = vpop.f32.mrb[14].mxu1 }
 0x111   : > { %4082 = vst [vmem:[#allocation26_spill] sm:$0xff] %v2775_v44  ;;  %4083 = vst [vmem:[#allocation27_spill] sm:$0xff] %v2777_v45  ;;  %v632_v25 = vrot.slane %v631_v24, 2  ;;  %v642_v46 = vrot.slane %v619_v28, 4  ;;  %v2779_v49 = vadd.f32 %v608_v31, %v589_v22  ;;  %v583_v53 = vmul.f32 0.25, %v2775_v44  ;;  %v2782_v54 = vpop.f32.mrb[15].mxu1 }
 0x112   : > { %4084 = vst [vmem:[#allocation28_spill] sm:$0xff] %v2782_v54  ;;  %v627_v27 = vadd.f32 %v626_v34, %v625_v17  ;;  %v611_v56 = vadd.f32 %v610_v35, %v582_v42  ;;  %v637_v58 = vadd.f32 %v636_v37, %v618_v18  ;;  %v590_v0 = vmul.f32 0.25, %v2777_v45 }
 0x113   : > { %v633_v57 = vadd.f32 %v632_v25, %v631_v24  ;;  %v643_v59 = vadd.f32 %v642_v46, %v619_v28  ;;  %v614_v60 = vadd.f32 %v613_v40, %v583_v53  ;;  %v591_v12 = vmul.f32 0.25, %v2782_v54 }
 0x114   : > { %v628_v2 = vrot.slane %v627_v27, 1  ;;  %v2786_v21 = vadd.f32 %v611_v56, %v590_v0  ;;  %v638_v31 = vrot.slane %v637_v58, 2  ;;  %v620_v40 = vmul.f32 %v2772_v41, %v2772_v41 }
 0x115   : > { %v634_v8 = vrot.slane %v633_v57, 1  ;;  %v644_v44 = vrot.slane %v643_v59, 2  ;;  %v2788_v33 = vadd.f32 %v614_v60, %v591_v12  ;;  %v621_v37 = vmul.f32 %v2779_v49, %v2779_v49 }
 0x116   : > { %v629_v14 = vadd.f32 %v628_v2, %v627_v27  ;;  %v639_v24 = vadd.f32 %v638_v31, %v637_v58  ;;  %v648_v42 = vrot.slane %v620_v40, 4 }
 0x117   : > { %v635_v22 = vadd.f32 %v634_v8, %v633_v57  ;;  %v645_v28 = vadd.f32 %v644_v44, %v643_v59  ;;  %v654_v53 = vrot.slane %v621_v37, 4 }
 0x118   : > { %2290 = vrsqrt.f32 %v629_v14  ;;  %v728_v35 = vadd.f32 1.0, %v629_v14  ;;  %v640_v25 = vrot.slane %v639_v24, 1  ;;  %v649_v56 = vadd.f32 %v648_v42, %v620_v40 }
 0x119   : > { %2292 = vrsqrt.f32 %v635_v22  ;;  %v729_v17 = vadd.f32 1.0, %v635_v22  ;;  %v646_v46 = vrot.slane %v645_v28, 1  ;;  %vm674_vm1 = vcmp.eq.f32.partialorder %v629_v14, inf }
 0x11a   : > { %v736_v18 = vadd.f32 0.0001, %v728_v35  ;;  %v641_v2 = vadd.f32 %v640_v25, %v639_v24  ;;  %v677_v58 = vand.u32 2147483648, %v629_v14  ;;  %v655_v59 = vadd.f32 %v654_v53, %v621_v37 }
 0x11b   : > { %v737_v34 = vadd.f32 0.0001, %v729_v17  ;;  %v2794_v0 = vadd.f32 %v646_v46, %v645_v28  ;;  %vm676_vm2 = vcmp.eq.f32.partialorder %v629_v14, 0.0  ;;  %vm681_vm3 = vcmp.eq.f32.partialorder %v635_v22, inf }
 0x11c   : > { %2294 = vrcp.f32 %v736_v18  ;;  %v684_v12 = vand.u32 2147483648, %v635_v22  ;;  %vm683_vm4 = vcmp.eq.f32.partialorder %v635_v22, 0.0  ;;  %v650_v17 = vrot.slane %v649_v56, 2 }
 0x11d   : > { %2296 = vrcp.f32 %v737_v34  ;;  %v730_v40 = vadd.f32 1.0, %v641_v2  ;;  %v731_v42 = vadd.f32 1.0, %v2794_v0  ;;  %v656_v53 = vrot.slane %v655_v59, 2 }
 0x11e   : > { %2298 = vrsqrt.f32 %v641_v2  ;;  %v651_v37 = vadd.f32 %v650_v17, %v649_v56  ;;  %vm688_vm5 = vcmp.eq.f32.partialorder %v641_v2, inf  ;;  %vm690_vm6 = vcmp.eq.f32.partialorder %v641_v2, 0.0 }
 0x11f   : > { %2300 = vrsqrt.f32 %v2794_v0  ;;  %vm695_vm7 = vcmp.eq.f32.partialorder %v2794_v0, inf  ;;  %vm697_vm8 = vcmp.eq.f32.partialorder %v2794_v0, 0.0 }
 0x122   : > { %v2291_v27 = vpop.eup %2290 }
 0x123   : > { %v2293_v57 = vpop.eup %2292  ;;  %v673_v60 = vmul.f32 %v2291_v27, %v629_v14  ;;  %v738_v27 = vadd.f32 0.0001, %v730_v40 }
 0x124   : > { %v680_v44 = vmul.f32 %v2293_v57, %v635_v22 }
 0x125   : > { %v675_v8 = vsel %vm674_vm1, %v629_v14, %v673_v60  ;;  %2302 = vrcp.f32 %v738_v27  ;;  %v698_v27 = vand.u32 2147483648, %v2794_v0 }
 0x126   : > { %v678_v31 = vsel %vm676_vm2, %v677_v58, %v675_v8  ;;  %v682_v35 = vsel %vm681_vm3, %v635_v22, %v680_v44  ;;  %v2295_v18 = vpop.eup %2294  ;;  %v739_v22 = vadd.f32 0.0001, %v731_v42 }
 0x127   : > { %v685_v34 = vsel %vm683_vm4, %v684_v12, %v682_v35  ;;  %v2297_v24 = vpop.eup %2296  ;;  %v745_v28 = vmul.f32 %v2295_v18, %v678_v31  ;;  %v652_v12 = vrot.slane %v651_v37, 1  ;;  %v657_v31 = vadd.f32 %v656_v53, %v655_v59 }
 0x128   : > { %v747_v25 = vmul.f32 %v2297_v24, %v685_v34  ;;  %2304 = vrcp.f32 %v739_v22  ;;  %v2299_v35 = vpop.eup %2298  ;;  %v622_v59 = vmul.f32 %v2786_v21, %v2786_v21 }
 0x129   : > { %v760_v46 = vmul.f32 %v745_v28, %v2732_v48  ;;  %v2824_v17 = vadd.f32 %v652_v12, %v651_v37  ;;  %v658_v18 = vrot.slane %v657_v31, 1  ;;  %v2301_v34 = vpop.eup %2300  ;;  %v687_v40 = vmul.f32 %v2299_v35, %v641_v2 }
 0x12a   : > { %v761_v14 = vmul.f32 %v747_v25, %v2739_v52  ;;  %v694_v24 = vmul.f32 %v2301_v34, %v2794_v0  ;;  %v691_v25 = vand.u32 2147483648, %v641_v2 }
 0x12b   : > { %v2801_v57 = vmul.f32 %v760_v46, %v2670_v61  ;;  %v2804_v60 = vmul.f32 %v760_v46, %v2673_v63  ;;  %v2807_v58 = vmul.f32 %v760_v46, %v2718_v36  ;;  %v2810_v44 = vmul.f32 %v760_v46, %v2723_v39 }
 0x12c   : > { %v2813_v48 = vmul.f32 %v761_v14, %v2675_v1  ;;  %v2816_v52 = vmul.f32 %v761_v14, %v2679_v4  ;;  %v2819_v56 = vmul.f32 %v761_v14, %v2721_v38  ;;  %v2822_v8 = vmul.f32 %v761_v14, %v2727_v43 }
 0x12d   : > { %2306 = vrsqrt.f32 %v2824_v17  ;;  %v2827_v42 = vadd.f32 %v658_v18, %v657_v31  ;;  %v732_v46 = vadd.f32 1.0, %v2824_v17  ;;  %v689_v14 = vsel %vm688_vm5, %v641_v2, %v687_v40 }
 0x12e   : > { %v692_v53 = vsel %vm690_vm6, %v691_v25, %v689_v14  ;;  %v696_v12 = vsel %vm695_vm7, %v2794_v0, %v694_v24  ;;  %v660_v40 = vrot.slane %v622_v59, 4  ;;  %vm702_vm9 = vcmp.eq.f32.partialorder %v2824_v17, inf }
 0x12f   : > { %v2303_v28 = vpop.eup %2302  ;;  %2308 = vrsqrt.f32 %v2827_v42  ;;  %v699_v31 = vsel %vm697_vm8, %v698_v27, %v696_v12  ;;  %v740_v35 = vadd.f32 0.0001, %v732_v46  ;;  %v733_v2 = vadd.f32 1.0, %v2827_v42 }
 0x130   : > { %v749_v22 = vmul.f32 %v2303_v28, %v692_v53  ;;  %v944_v43 = vrot.slane %v2810_v44, 4  ;;  %v902_v38 = vrot.slane %v2819_v56, 4  ;;  %vm704_vm10 = vcmp.eq.f32.partialorder %v2824_v17, 0.0 }
 0x131   : > { %2310 = vrcp.f32 %v740_v35  ;;  %v741_v53 = vadd.f32 0.0001, %v733_v2  ;;  %v800_v2 = vrot.slane %v2801_v57, 4  ;;  %vm709_vm11 = vcmp.eq.f32.partialorder %v2827_v42, inf }
 0x132   : > { %v2305_v37 = vpop.eup %2304  ;;  %v762_v18 = vmul.f32 %v749_v22, %v2752_v3  ;;  %v661_v3 = vadd.f32 %v660_v40, %v622_v59  ;;  %v896_v40 = vrot.slane %v2807_v58, 4  ;;  %v945_v39 = vadd.f32 %v944_v43, %v2810_v44 }
 0x133   : > { %v751_v34 = vmul.f32 %v2305_v37, %v699_v31  ;;  %v623_v37 = vmul.f32 %v2788_v33, %v2788_v33  ;;  %2312 = vrcp.f32 %v741_v53  ;;  %v854_v53 = vrot.slane %v2816_v52, 4 }
 0x134   : > { %v2841_v25 = vmul.f32 %v762_v18, %v2682_v6  ;;  %v2844_v14 = vmul.f32 %v762_v18, %v2685_v9  ;;  %v2847_v28 = vmul.f32 %v762_v18, %v2730_v47  ;;  %v2850_v24 = vmul.f32 %v762_v18, %v2737_v51 }
 0x135   : > { %v763_v46 = vmul.f32 %v751_v34, %v2759_v11  ;;  %v662_v59 = vrot.slane %v661_v3, 2  ;;  %v848_v18 = vrot.slane %v2804_v60, 4  ;;  %v666_v34 = vrot.slane %v623_v37, 4 }
 0x136   : > { %v897_v51 = vadd.f32 %v896_v40, %v2807_v58  ;;  %vm711_vm12 = vcmp.eq.f32.partialorder %v2827_v42, 0.0  ;;  %v812_v40 = vrot.slane %v2841_v25, 4 }
 0x137   : > { %v2307_v0 = vpop.eup %2306  ;;  %v2856_v27 = vmul.f32 %v763_v46, %v2687_v10  ;;  %v2859_v22 = vmul.f32 %v763_v46, %v2691_v13  ;;  %v2862_v12 = vmul.f32 %v763_v46, %v2735_v50  ;;  %v2865_v31 = vmul.f32 %v763_v46, %v2743_v55 }
 0x138   : > { %v701_v11 = vmul.f32 %v2307_v0, %v2824_v17  ;;  %v806_v0 = vrot.slane %v2813_v48, 4  ;;  %v705_v55 = vand.u32 2147483648, %v2824_v17  ;;  %v2881_v13 = vadd.f32 %v662_v59, %v661_v3 }
 0x139   : > { %v2309_v35 = vpop.eup %2308  ;;  %v801_v10 = vadd.f32 %v800_v2, %v2801_v57  ;;  %v2889_v36 = vadd.f32 %v666_v34, %v623_v37  ;;  %v855_v3 = vadd.f32 %v854_v53, %v2816_v52  ;;  %v712_v59 = vand.u32 2147483648, %v2827_v42 }
 0x13a   : > { %v703_v50 = vsel %vm702_vm9, %v2824_v17, %v701_v11  ;;  %v708_v46 = vmul.f32 %v2309_v35, %v2827_v42  ;;  %v849_v11 = vadd.f32 %v848_v18, %v2804_v60  ;;  %v950_v35 = vrot.slane %v2822_v8, 4 }
 0x13b   : > { %v2311_v4 = vpop.eup %2310  ;;  %v706_v1 = vsel %vm704_vm10, %v705_v55, %v703_v50  ;;  %v807_v17 = vadd.f32 %v806_v0, %v2813_v48  ;;  %v903_v57 = vadd.f32 %v902_v38, %v2819_v56  ;;  %v802_v55 = vrot.slane %v801_v10, 2 }
 0x13c   : > { %v710_v47 = vsel %vm709_vm11, %v2827_v42, %v708_v46  ;;  %v753_v60 = vmul.f32 %v2311_v4, %v706_v1  ;;  %v850_v58 = vrot.slane %v849_v11, 2  ;;  %v951_v43 = vadd.f32 %v950_v35, %v2822_v8 }
 0x13d   : > { %v2313_v50 = vpop.eup %2312  ;;  %v713_v44 = vsel %vm711_vm12, %v712_v59, %v710_v47  ;;  %v898_v2 = vrot.slane %v897_v51, 2  ;;  %v946_v37 = vrot.slane %v945_v39, 2  ;;  %v664_v18 = vrot.slane %v2881_v13, 1 }
 0x13e   : > { %v808_v52 = vrot.slane %v807_v17, 2  ;;  %v856_v34 = vrot.slane %v855_v3, 2  ;;  %v860_v1 = vrot.slane %v2844_v14, 4  ;;  %v908_v4 = vrot.slane %v2847_v28, 4 }
 0x13f   : > { %v956_v38 = vrot.slane %v2850_v24, 4  ;;  %v764_v56 = vmul.f32 %v753_v60, %v2772_v41  ;;  %v755_v8 = vmul.f32 %v2313_v50, %v713_v44  ;;  %v803_v47 = vadd.f32 %v802_v55, %v801_v10 }
 0x140   : > { %v851_v42 = vadd.f32 %v850_v58, %v849_v11  ;;  %v904_v46 = vrot.slane %v903_v57, 2  ;;  %v952_v0 = vrot.slane %v951_v43, 2  ;;  %v899_v53 = vadd.f32 %v898_v2, %v897_v51 }
 0x141   : > { %v2905_v35 = vmul.f32 %v764_v56, %v2694_v16  ;;  %v2908_v59 = vmul.f32 %v764_v56, %v2697_v19  ;;  %v2911_v48 = vmul.f32 %v764_v56, %v2750_v62  ;;  %v947_v9 = vadd.f32 %v946_v37, %v945_v39 }
 0x142   : > { %v813_v63 = vadd.f32 %v812_v40, %v2841_v25  ;;  %v2915_v41 = vmul.f32 %v764_v56, %v2757_v7  ;;  %v765_v10 = vmul.f32 %v755_v8, %v2779_v49  ;;  %v809_v11 = vadd.f32 %v808_v52, %v807_v17 }
 0x143   : > { %v861_v51 = vadd.f32 %v860_v1, %v2844_v14  ;;  %v909_v60 = vadd.f32 %v908_v4, %v2847_v28  ;;  %v957_v50 = vadd.f32 %v956_v38, %v2850_v24  ;;  %v818_v55 = vrot.slane %v2856_v27, 4 }
 0x144   : > { %v2923_v58 = vmul.f32 %v765_v10, %v2699_v20  ;;  %v2926_v39 = vmul.f32 %v765_v10, %v2703_v23  ;;  %v2929_v25 = vmul.f32 %v765_v10, %v2755_v5  ;;  %v857_v44 = vadd.f32 %v856_v34, %v855_v3 }
 0x145   : > { %v905_v49 = vadd.f32 %v904_v46, %v903_v57  ;;  %v866_v17 = vrot.slane %v2859_v22, 4  ;;  %v2933_v14 = vmul.f32 %v765_v10, %v2763_v15  ;;  %v2935_v28 = vadd.f32 %v952_v0, %v951_v43 }
 0x146   : > { %v814_v24 = vrot.slane %v813_v63, 2  ;;  %v914_v2 = vrot.slane %v2862_v12, 4  ;;  %v962_v37 = vrot.slane %v2865_v31, 4  ;;  %v804_v52 = vrot.slane %v803_v47, 1 }
 0x147   : > { %v862_v40 = vrot.slane %v861_v51, 2  ;;  %v910_v1 = vrot.slane %v909_v60, 2  ;;  %v2940_v4 = vadd.f32 %v664_v18, %v2881_v13  ;;  %v852_v3 = vrot.slane %v851_v42, 1 }
 0x148   : > { %v900_v57 = vrot.slane %v899_v53, 1  ;;  %v958_v34 = vrot.slane %v957_v50, 2  ;;  %v819_v38 = vadd.f32 %v818_v55, %v2856_v27  ;;  %v948_v56 = vrot.slane %v947_v9, 1 }
 0x149   : > { %v810_v8 = vrot.slane %v809_v11, 1  ;;  %v858_v43 = vrot.slane %v857_v44, 1  ;;  %v867_v46 = vadd.f32 %v866_v17, %v2859_v22  ;;  %v906_v0 = vrot.slane %v905_v49, 1 }
 0x14a   : > { %v815_v10 = vadd.f32 %v814_v24, %v813_v63  ;;  %v915_v15 = vadd.f32 %v914_v2, %v2862_v12  ;;  %v963_v5 = vadd.f32 %v962_v37, %v2865_v31  ;;  %v863_v13 = vadd.f32 %v862_v40, %v861_v51 }
 0x14b   : > { %v911_v18 = vadd.f32 %v910_v1, %v909_v60  ;;  %2314 = vrsqrt.f32 %v2940_v4  ;;  %v2948_v20 = vadd.f32 %v804_v52, %v803_v47  ;;  %v2950_v27 = vadd.f32 %v852_v3, %v851_v42 }
 0x14c   : > { %v959_v55 = vadd.f32 %v958_v34, %v957_v50  ;;  %v820_v7 = vrot.slane %v819_v38, 2  ;;  %v2952_v62 = vadd.f32 %v900_v57, %v899_v53  ;;  %v2954_v22 = vadd.f32 %v948_v56, %v947_v9 }
 0x14d   : > { %4085 = vst [vmem:[#allocation29_spill] sm:$0xff] %v2948_v20  ;;  %4086 = vst [vmem:[#allocation30_spill] sm:$0xff] %v2950_v27  ;;  %v2956_v63 = vadd.f32 %v810_v8, %v809_v11  ;;  %v868_v12 = vrot.slane %v867_v46, 2  ;;  %v2958_v31 = vadd.f32 %v858_v43, %v857_v44  ;;  %v816_v17 = vrot.slane %v815_v10, 1 }
 0x14e   : > { %4087 = vst [vmem:[#allocation31_spill] sm:$0xff] %v2952_v62  ;;  %4088 = vst [vmem:[#allocation32_spill] sm:$0xff] %v2954_v22  ;;  %v916_v51 = vrot.slane %v915_v15, 2  ;;  %v964_v60 = vrot.slane %v963_v5, 2  ;;  %v2960_v24 = vadd.f32 %v906_v0, %v905_v49  ;;  %v864_v47 = vrot.slane %v863_v13, 1 }
 0x14f   : > { %4089 = vst [vmem:[#allocation33_spill] sm:$0xff] %v2956_v63  ;;  %4090 = vst [vmem:[#allocation34_spill] sm:$0xff] %v2958_v31  ;;  %v912_v2 = vrot.slane %v911_v18, 1  ;;  %v4092_v42 = vrot.slane %v2889_v36, 2  ;;  %v2966_v53 = vadd.f32 0.0001, %v2948_v20  ;;  %v821_v44 = vadd.f32 %v820_v7, %v819_v38 }
 0x150   : > { %4091 = vst [vmem:[#allocation35_spill] sm:$0xff] %v2960_v24  ;;  %v2969_v9 = vadd.f32 0.0001, %v2950_v27  ;;  %v960_v11 = vrot.slane %v959_v55, 1  ;;  %v2972_v37 = vadd.f32 0.0001, %v2952_v62  ;;  %v869_v40 = vadd.f32 %v868_v12, %v867_v46 }
 0x151   : > { %v669_v50 = vadd.f32 %v4092_v42, %v2889_v36  ;;  %v2975_v49 = vadd.f32 0.0001, %v2954_v22  ;;  %v2978_v52 = vadd.f32 0.0001, %v2956_v63  ;;  %v2981_v36 = vadd.f32 0.0001, %v2958_v31 }
 0x152   : > { %v2983_v1 = vadd.f32 %v816_v17, %v815_v10  ;;  %v917_v3 = vadd.f32 %v916_v51, %v915_v15  ;;  %v2985_v57 = vadd.f32 %v964_v60, %v963_v5  ;;  %v2987_v34 = vadd.f32 %v864_v47, %v863_v13 }
 0x153   : > { %v2989_v7 = vadd.f32 %v912_v2, %v911_v18  ;;  %v734_v38 = vadd.f32 1.0, %v2940_v4  ;;  %v670_v56 = vrot.slane %v669_v50, 1  ;;  %v2993_v8 = vadd.f32 0.0001, %v2960_v24 }
 0x154   : > { %4093 = vst [vmem:[#allocation36_spill] sm:$0xff] %v2983_v1  ;;  %4094 = vst [vmem:[#allocation37_spill] sm:$0xff] %v2987_v34  ;;  %v2995_v43 = vadd.f32 %v960_v11, %v959_v55  ;;  %v822_v46 = vrot.slane %v821_v44, 1  ;;  %v824_v0 = vrot.slane %v2905_v35, 4  ;;  %v870_v12 = vrot.slane %v869_v40, 1 }
 0x155   : > { %4095 = vst [vmem:[#allocation38_spill] sm:$0xff] %v2989_v7  ;;  %v2315_v10 = vpop.eup %2314  ;;  %v872_v5 = vrot.slane %v2908_v59, 4  ;;  %v742_v15 = vadd.f32 0.0001, %v734_v38  ;;  %v2999_v13 = vadd.f32 %v670_v56, %v669_v50  ;;  %v3002_v18 = vadd.f32 0.0001, %v2983_v1 }
 0x156   : > { %4096 = vst [vmem:[#allocation39_spill] sm:$0xff] %v2995_v43  ;;  %v918_v17 = vrot.slane %v917_v3, 1  ;;  %v920_v60 = vrot.slane %v2911_v48, 4  ;;  %v3007_v55 = vadd.f32 0.0001, %v2987_v34  ;;  %v968_v2 = vrot.slane %v2915_v41, 4 }
 0x157   : > { %v3010_v47 = vadd.f32 0.0001, %v2989_v7  ;;  %2316 = vrcp.f32 %v742_v15  ;;  %v825_v42 = vadd.f32 %v824_v0, %v2905_v35  ;;  %v715_v50 = vmul.f32 %v2315_v10, %v2940_v4 }
 0x158   : > { %2318 = vrsqrt.f32 %v2999_v13  ;;  %v735_v11 = vadd.f32 1.0, %v2999_v13  ;;  %v3018_v38 = vadd.f32 0.0001, %v2995_v43  ;;  %v3020_v56 = vadd.f32 %v822_v46, %v821_v44 }
 0x159   : > { %v3022_v51 = vadd.f32 %v870_v12, %v869_v40  ;;  %v873_v23 = vadd.f32 %v872_v5, %v2908_v59  ;;  %v3027_v24 = vadd.f32 %v918_v17, %v917_v3  ;;  %v921_v35 = vadd.f32 %v920_v60, %v2911_v48 }
 0x15a   : > { %4097 = vst [vmem:[#allocation40_spill] sm:$0xff] %v3020_v56  ;;  %v743_v0 = vadd.f32 0.0001, %v735_v11  ;;  %v969_v10 = vadd.f32 %v968_v2, %v2915_v41  ;;  %v830_v31 = vrot.slane %v2923_v58, 4  ;;  %v878_v63 = vrot.slane %v2926_v39, 4 }
 0x15b   : > { %4098 = vst [vmem:[#allocation41_spill] sm:$0xff] %v3022_v51  ;;  %4099 = vst [vmem:[#allocation42_spill] sm:$0xff] %v3027_v24  ;;  %vm716_vm13 = vcmp.eq.f32.partialorder %v2940_v4, inf  ;;  %v826_v44 = vrot.slane %v825_v42, 2  ;;  %v926_v40 = vrot.slane %v2929_v25, 4  ;;  %v874_v46 = vrot.slane %v873_v23, 2 }
 0x15c   : > { %v717_v59 = vsel %vm716_vm13, %v2940_v4, %v715_v50  ;;  %2320 = vrcp.f32 %v743_v0  ;;  %v3037_v3 = vadd.f32 0.0001, %v3020_v56  ;;  %v3040_v48 = vadd.f32 0.0001, %v3022_v51 }
 0x15d   : > { %v719_v41 = vand.u32 2147483648, %v2940_v4  ;;  %v3044_v12 = vadd.f32 0.0001, %v3027_v24  ;;  %v922_v5 = vrot.slane %v921_v35, 2  ;;  %v974_v17 = vrot.slane %v2933_v14, 4 }
 0x15e   : > { %vm718_vm14 = vcmp.eq.f32.partialorder %v2940_v4, 0.0  ;;  %v970_v60 = vrot.slane %v969_v10, 2  ;;  %v831_v2 = vadd.f32 %v830_v31, %v2923_v58  ;;  %v879_v50 = vadd.f32 %v878_v63, %v2926_v39 }
 0x15f   : > { %v720_v11 = vsel %vm718_vm14, %v719_v41, %v717_v59  ;;  %v827_v51 = vadd.f32 %v826_v44, %v825_v42  ;;  %v927_v24 = vadd.f32 %v926_v40, %v2929_v25  ;;  %v875_v39 = vadd.f32 %v874_v46, %v873_v23 }
 0x160   : > { %v923_v59 = vadd.f32 %v922_v5, %v921_v35  ;;  %v3064_v42 = vadd.f32 %v974_v17, %v2933_v14  ;;  %v971_v44 = vadd.f32 %v970_v60, %v969_v10  ;;  %v832_v40 = vrot.slane %v831_v2, 2 }
 0x161   : > { %v2317_v56 = vpop.eup %2316  ;;  %v880_v41 = vrot.slane %v879_v50, 2  ;;  %v828_v15 = vrot.slane %v827_v51, 1  ;;  %v928_v4 = vrot.slane %v927_v24, 2  ;;  %vm723_vm15 = vcmp.eq.f32.partialorder %v2999_v13, inf }
 0x162   : > { %v2319_v63 = vpop.eup %2318  ;;  %v757_v25 = vmul.f32 %v2317_v56, %v720_v11  ;;  %v876_v23 = vrot.slane %v875_v39, 1  ;;  %vm725_vm0 = vcmp.eq.f32.partialorder %v2999_v13, 0.0  ;;  %v726_v14 = vand.u32 2147483648, %v2999_v13 }
 0x163   : > { %v722_v43 = vmul.f32 %v2319_v63, %v2999_v13  ;;  %v924_v60 = vrot.slane %v923_v59, 1  ;;  %v833_v11 = vadd.f32 %v832_v40, %v831_v2  ;;  %v3076_v22 = vadd.f32 %v828_v15, %v827_v51  ;;  %v4103_v15 = vld [vmem:[#allocation12_spill] sm:$0xff] }
 0x164   : > { %v766_v0 = vmul.f32 %v757_v25, %v2786_v21  ;;  %v972_v21 = vrot.slane %v971_v44, 1  ;;  %v929_v7 = vadd.f32 %v928_v4, %v927_v24 }
 0x165   : > { %v724_v46 = vsel %vm723_vm15, %v2999_v13, %v722_v43  ;;  %4100 = vst [vmem:[#allocation43_spill] sm:$0xff] %v3076_v22  ;;  %v881_v13 = vadd.f32 %v880_v41, %v879_v50  ;;  %v4104_v50 = vld [vmem:[#allocation26_spill] sm:$0xff] }
 0x166   : > { %v2321_v35 = vpop.eup %2320  ;;  %v774_v56 = vmul.f32 %v766_v0, %v2706_v26  ;;  %v782_v10 = vmul.f32 %v766_v0, %v2709_v29  ;;  %v790_v5 = vmul.f32 %v766_v0, %v2770_v32  ;;  %v798_v17 = vmul.f32 %v766_v0, %v2777_v45 }
 0x167   : > { %v727_v63 = vsel %vm725_vm0, %v726_v14, %v724_v46  ;;  %v3078_v32 = vadd.f32 %v876_v23, %v875_v39  ;;  %v3080_v0 = vadd.f32 %v924_v60, %v923_v59  ;;  %v834_v45 = vrot.slane %v833_v11, 1 }
 0x168   : > { %v836_v25 = vrot.slane %v774_v56, 4  ;;  %v884_v31 = vrot.slane %v782_v10, 4  ;;  %v932_v43 = vrot.slane %v790_v5, 4  ;;  %v980_v58 = vrot.slane %v798_v17, 4 }
 0x169   : > { %v759_v62 = vmul.f32 %v2321_v35, %v727_v63  ;;  %4101 = vst [vmem:[#allocation44_spill] sm:$0xff] %v3078_v32  ;;  %4102 = vst [vmem:[#allocation45_spill] sm:$0xff] %v3080_v0  ;;  %v1028_v23 = vadd.f32 0.0001, %v3076_v22  ;;  %v3093_v60 = vadd.f32 %v972_v21, %v971_v44  ;;  %v4110_v44 = vmax.f32 %v2966_v53, %v3002_v18 }
 0x16a   : > { %v837_v34 = vadd.f32 %v836_v25, %v774_v56  ;;  %v885_v27 = vadd.f32 %v884_v31, %v782_v10  ;;  %v933_v1 = vadd.f32 %v932_v43, %v790_v5  ;;  %v981_v20 = vadd.f32 %v980_v58, %v798_v17 }
 0x16b   : > { %v767_v2 = vmul.f32 %v759_v62, %v2788_v33  ;;  %v3091_v56 = vadd.f32 0.0001, %v3078_v32  ;;  %4105 = vst [vmem:[#allocation46_spill] sm:$0xff] %v3093_v60  ;;  %v1057_v21 = vmax.f32 %v4110_v44, %v1028_v23 }
 0x16c   : > { %v838_v40 = vrot.slane %v837_v34, 2  ;;  %v886_v46 = vrot.slane %v885_v27, 2  ;;  %v934_v14 = vrot.slane %v933_v1, 2  ;;  %v982_v29 = vrot.slane %v981_v20, 2 }
 0x16d   : > { %v775_v51 = vmul.f32 %v767_v2, %v2711_v30  ;;  %v783_v24 = vmul.f32 %v767_v2, %v4103_v15  ;;  %v791_v4 = vmul.f32 %v767_v2, %v4104_v50  ;;  %v3087_v31 = vmul.f32 %v767_v2, %v2782_v54 }
 0x16e   : > { %v839_v58 = vadd.f32 %v838_v40, %v837_v34  ;;  %v887_v39 = vadd.f32 %v886_v46, %v885_v27  ;;  %v935_v59 = vadd.f32 %v934_v14, %v933_v1  ;;  %v983_v41 = vadd.f32 %v982_v29, %v981_v20 }
 0x16f   : > { %v842_v33 = vrot.slane %v775_v51, 4  ;;  %v890_v62 = vrot.slane %v783_v24, 4  ;;  %v938_v35 = vrot.slane %v791_v4, 4  ;;  %v882_v34 = vrot.slane %v881_v13, 1 }
 0x170   : > { %v840_v10 = vrot.slane %v839_v58, 1  ;;  %v888_v5 = vrot.slane %v887_v39, 1  ;;  %v936_v17 = vrot.slane %v935_v59, 1  ;;  %v984_v63 = vrot.slane %v983_v41, 1 }
 0x171   : > { %v843_v25 = vadd.f32 %v842_v33, %v775_v51  ;;  %v891_v43 = vadd.f32 %v890_v62, %v783_v24  ;;  %v3102_v1 = vadd.f32 0.0001, %v3080_v0  ;;  %v3104_v2 = vadd.f32 %v834_v45, %v833_v11  ;;  %v4140_v0 = vld [vmem:[#allocation27_spill] sm:$0xff] }
 0x172   : > { %v3095_v27 = vadd.f32 %v840_v10, %v839_v58  ;;  %v3097_v20 = vadd.f32 %v888_v5, %v887_v39  ;;  %v3099_v29 = vadd.f32 %v936_v17, %v935_v59  ;;  %v939_v46 = vadd.f32 %v938_v35, %v791_v4 }
 0x173   : > { %4109 = vst [vmem:[#allocation50_spill] sm:$0xff] %v3104_v2  ;;  %v844_v40 = vrot.slane %v843_v25, 2  ;;  %v4111_v14 = vmax.f32 %v2969_v9, %v3007_v55  ;;  %v3116_v39 = vadd.f32 0.0001, %v3093_v60  ;;  %v930_v45 = vrot.slane %v929_v7, 1 }
 0x174   : > { %4106 = vst [vmem:[#allocation47_spill] sm:$0xff] %v3095_v27  ;;  %4107 = vst [vmem:[#allocation48_spill] sm:$0xff] %v3097_v20  ;;  %v1030_v24 = vadd.f32 0.0001, %v3095_v27  ;;  %v1038_v58 = vadd.f32 0.0001, %v3097_v20  ;;  %v3118_v11 = vadd.f32 %v984_v63, %v983_v41  ;;  %v3121_v10 = vadd.f32 %v882_v34, %v881_v13 }
 0x175   : > { %4108 = vst [vmem:[#allocation49_spill] sm:$0xff] %v3099_v29  ;;  %v1063_v51 = vmax.f32 %v4111_v14, %v3091_v56  ;;  %v892_v4 = vrot.slane %v891_v43, 2  ;;  %v1046_v59 = vadd.f32 0.0001, %v3099_v29  ;;  %v845_v35 = vadd.f32 %v844_v40, %v843_v25 }
 0x176   : > { %4112 = vst [vmem:[#allocation51_spill] sm:$0xff] %v3118_v11  ;;  %v1058_v33 = vmax.f32 %v1057_v21, %v1030_v24  ;;  %4113 = vst [vmem:[#allocation52_spill] sm:$0xff] %v3121_v10  ;;  %v3125_v17 = vadd.f32 0.0001, %v3104_v2  ;;  %v940_v44 = vrot.slane %v939_v46, 2  ;;  %v4114_v14 = vmax.f32 %v2972_v37, %v3010_v47 }
 0x177   : > { %v1064_v62 = vmax.f32 %v1063_v51, %v1038_v58  ;;  %v3133_v51 = vadd.f32 %v930_v45, %v929_v7  ;;  %v3136_v13 = vadd.f32 0.0001, %v3118_v11  ;;  %v893_v34 = vadd.f32 %v892_v4, %v891_v43 }
 0x178   : > { %v1069_v41 = vmax.f32 %v4114_v14, %v3102_v1  ;;  %v1080_v63 = vsub.f32 %v2966_v53, %v1058_v33  ;;  %v1082_v54 = vsub.f32 %v3002_v18, %v1058_v33  ;;  %v1084_v21 = vsub.f32 %v1028_v23, %v1058_v33 }
 0x179   : > { %4115 = vst [vmem:[#allocation53_spill] sm:$0xff] %v3133_v51  ;;  %v1086_v25 = vsub.f32 %v1030_v24, %v1058_v33  ;;  %v4116_v40 = vmax.f32 %v2975_v49, %v3018_v38  ;;  %v1088_v14 = vsub.f32 %v2969_v9, %v1064_v62  ;;  %v846_v60 = vrot.slane %v845_v35, 1 }
 0x17a   : > { %v1070_v2 = vmax.f32 %v1069_v41, %v1046_v59  ;;  %v1090_v53 = vsub.f32 %v3007_v55, %v1064_v62  ;;  %v941_v18 = vadd.f32 %v940_v44, %v939_v46  ;;  %v986_v7 = vrot.slane %v3087_v31, 4 }
 0x17b   : > { %v1075_v5 = vmax.f32 %v4116_v40, %v3116_v39  ;;  %v4117_v23 = vmax.f32 %v2978_v52, %v3037_v3  ;;  %v1092_v43 = vsub.f32 %v3091_v56, %v1064_v62  ;;  %v1112_v45 = vmul.f32 1.442695, %v1080_v63 }
 0x17c   : > { %v1116_v4 = vmul.f32 1.442695, %v1082_v54  ;;  %v1120_v33 = vmul.f32 1.442695, %v1084_v21  ;;  %v1094_v40 = vsub.f32 %v1038_v58, %v1064_v62  ;;  %v1124_v9 = vmul.f32 1.442695, %v1086_v25 }
 0x17d   : > { %v1060_v24 = vmax.f32 %v4117_v23, %v3125_v17  ;;  %v1076_v41 = vmax.f32 %v1075_v5, %v3136_v13  ;;  %v894_v11 = vrot.slane %v893_v34, 1  ;;  %v1096_v55 = vsub.f32 %v2972_v37, %v1070_v2 }
 0x17e   : > { %2322 = vpow2.f32 %v1112_v45  ;;  %v1128_v46 = vmul.f32 1.442695, %v1088_v14  ;;  %v3152_v44 = vadd.f32 %v846_v60, %v845_v35  ;;  %v1098_v29 = vsub.f32 %v3010_v47, %v1070_v2 }
 0x17f   : > { %2324 = vpow2.f32 %v1116_v4  ;;  %v1132_v23 = vmul.f32 1.442695, %v1090_v53  ;;  %v987_v56 = vadd.f32 %v986_v7, %v3087_v31  ;;  %v1100_v54 = vsub.f32 %v3102_v1, %v1070_v2 }
 0x180   : > { %4118 = vst [vmem:[#allocation54_spill] sm:$0xff] %v3152_v44  ;;  %2326 = vpow2.f32 %v1120_v33  ;;  %v1136_v63 = vmul.f32 1.442695, %v1092_v43  ;;  %v942_v5 = vrot.slane %v941_v18, 1  ;;  %v1102_v58 = vsub.f32 %v1046_v59, %v1070_v2 }
 0x181   : > { %v1104_v62 = vsub.f32 %v2975_v49, %v1076_v41  ;;  %2328 = vpow2.f32 %v1124_v9  ;;  %v1140_v37 = vmul.f32 1.442695, %v1094_v40  ;;  %v1144_v21 = vmul.f32 1.442695, %v1096_v55 }
 0x182   : > { %2330 = vpow2.f32 %v1128_v46  ;;  %v3158_v60 = vadd.f32 %v894_v11, %v893_v34  ;;  %v3161_v47 = vadd.f32 0.0001, %v3152_v44  ;;  %v3164_v35 = vadd.f32 0.0001, %v3121_v10  ;;  %v4139_v10 = vld [vmem:[#allocation23_spill] sm:$0xff] }
 0x183   : > { %v1106_v31 = vsub.f32 %v3018_v38, %v1076_v41  ;;  %2332 = vpow2.f32 %v1132_v23  ;;  %v1148_v1 = vmul.f32 1.442695, %v1098_v29  ;;  %v1152_v2 = vmul.f32 1.442695, %v1100_v54 }
 0x184   : > { %4119 = vst [vmem:[#allocation55_spill] sm:$0xff] %v3158_v60  ;;  %2334 = vpow2.f32 %v1136_v63  ;;  %v988_v59 = vrot.slane %v987_v56, 2  ;;  %v3168_v49 = vmax.f32 %v1060_v24, %v3161_v47  ;;  %v1108_v25 = vsub.f32 %v3116_v39, %v1076_v41 }
 0x185   : > { %2336 = vpow2.f32 %v1140_v37  ;;  %v1156_v11 = vmul.f32 1.442695, %v1102_v58  ;;  %v3171_v34 = vadd.f32 %v942_v5, %v941_v18  ;;  %v1110_v14 = vsub.f32 %v3136_v13, %v1076_v41 }
 0x186   : > { %2338 = vpow2.f32 %v1144_v21  ;;  %v1160_v53 = vmul.f32 1.442695, %v1104_v62  ;;  %v3175_v38 = vadd.f32 0.0001, %v3158_v60  ;;  %v4121_v29 = vrot.slane %v3064_v42, 2 }
 0x187   : > { %4120 = vst [vmem:[#allocation56_spill] sm:$0xff] %v3171_v34  ;;  %v3181_v24 = vadd.f32 0.0001, %v3133_v51  ;;  %2340 = vpow2.f32 %v1148_v1  ;;  %v1164_v39 = vmul.f32 1.442695, %v1106_v31  ;;  %v989_v18 = vadd.f32 %v988_v59, %v987_v56  ;;  %v4133_v51 = vld [vmem:[#allocation13_spill] sm:$0xff] }
 0x188   : > { %v977_v7 = vadd.f32 %v4121_v29, %v3064_v42  ;;  %v3183_v43 = vpop.eup %2322  ;;  %2342 = vpow2.f32 %v1152_v2  ;;  %v4122_v13 = vmax.f32 %v2981_v36, %v3040_v48  ;;  %v1081_v4 = vsub.f32 %v2978_v52, %v3168_v49 }
 0x189   : > { %v3191_v33 = vpop.eup %2324  ;;  %2344 = vpow2.f32 %v1156_v11  ;;  %v1168_v42 = vmul.f32 1.442695, %v1108_v25  ;;  %v3194_v41 = vadd.f32 0.0001, %v3171_v34  ;;  %v1083_v40 = vsub.f32 %v3037_v3, %v3168_v49 }
 0x18a   : > { %v1066_v45 = vmax.f32 %v4122_v13, %v3164_v35  ;;  %v3198_v9 = vpop.eup %2326  ;;  %2346 = vpow2.f32 %v1160_v53  ;;  %v1172_v55 = vmul.f32 1.442695, %v1110_v14  ;;  %v1176_v46 = vadd.f32 %v3191_v33, %v3183_v43 }
 0x18b   : > { %v3205_v52 = vpop.eup %2328  ;;  %v4123_v56 = vrot.slane %v2935_v28, 1  ;;  %v978_v63 = vrot.slane %v977_v7, 1  ;;  %2348 = vpow2.f32 %v1164_v39  ;;  %v4125_v3 = vmax.f32 %v2993_v8, %v3044_v12 }
 0x18c   : > { %v3203_v23 = vmax.f32 %v1066_v45, %v3175_v38  ;;  %v3216_v58 = vpop.eup %2330  ;;  %v4126_v62 = vrot.slane %v2985_v57, 1  ;;  %v1177_v21 = vadd.f32 %v3198_v9, %v1176_v46  ;;  %v990_v31 = vrot.slane %v989_v18, 1 }
 0x18d   : > { %v3210_v54 = vadd.f32 %v4123_v56, %v2935_v28  ;;  %v1072_v5 = vmax.f32 %v4125_v3, %v3181_v24  ;;  %v1114_v1 = vmul.f32 1.442695, %v1081_v4  ;;  %v3224_v28 = vpop.eup %2332  ;;  %2350 = vpow2.f32 %v1168_v42 }
 0x18e   : > { %v3221_v37 = vadd.f32 %v4126_v62, %v2985_v57  ;;  %v1085_v59 = vsub.f32 %v3125_v17, %v3168_v49  ;;  %v1118_v25 = vmul.f32 1.442695, %v1083_v40  ;;  %v3231_v11 = vpop.eup %2334  ;;  %2352 = vpow2.f32 %v1172_v55 }
 0x18f   : > { %4124 = vst [vmem:[#allocation57_spill] sm:$0xff] %v3210_v54  ;;  %v3227_v2 = vmax.f32 %v1072_v5, %v3194_v41  ;;  %v1178_v57 = vadd.f32 %v3205_v52, %v1177_v21  ;;  %v1182_v14 = vadd.f32 %v3224_v28, %v3216_v58  ;;  %v1089_v53 = vsub.f32 %v2981_v36, %v3203_v23  ;;  %v3238_v29 = vpop.eup %2336 }
 0x190   : > { %4127 = vst [vmem:[#allocation58_spill] sm:$0xff] %v3221_v37  ;;  %v3240_v39 = vadd.f32 %v978_v63, %v977_v7  ;;  %v1091_v13 = vsub.f32 %v3040_v48, %v3203_v23  ;;  %2354 = vpow2.f32 %v1114_v1  ;;  %v3244_v17 = vpop.eup %2338  ;;  %v3247_v45 = vadd.f32 0.0001, %v3221_v37 }
 0x191   : > { %v1183_v4 = vadd.f32 %v3231_v11, %v1182_v14  ;;  %2356 = vrcp.f32 %v1178_v57  ;;  %v3250_v42 = vadd.f32 %v990_v31, %v989_v18  ;;  %v3252_v40 = vpop.eup %2340  ;;  %v3255_v36 = vadd.f32 0.0001, %v3210_v54 }
 0x192   : > { %4128 = vst [vmem:[#allocation59_spill] sm:$0xff] %v3240_v39  ;;  %v1097_v7 = vsub.f32 %v2993_v8, %v3227_v2  ;;  %2358 = vpow2.f32 %v1118_v25  ;;  %v1122_v48 = vmul.f32 1.442695, %v1085_v59  ;;  %v3259_v55 = vpop.eup %2342  ;;  %v1188_v56 = vadd.f32 %v3252_v40, %v3244_v17 }
 0x193   : > { %4129 = vst [vmem:[#allocation60_spill] sm:$0xff] %v3250_v42  ;;  %v1184_v46 = vadd.f32 %v3238_v29, %v1183_v4  ;;  %v1099_v18 = vsub.f32 %v3044_v12, %v3227_v2  ;;  %v1130_v63 = vmul.f32 1.442695, %v1089_v53  ;;  %v3266_v3 = vpop.eup %2344  ;;  %v3269_v5 = vadd.f32 0.0001, %v3240_v39 }
 0x194   : > { %v1134_v62 = vmul.f32 1.442695, %v1091_v13  ;;  %v3271_v8 = vpop.eup %2346  ;;  %v1077_v21 = vmax.f32 %v3255_v36, %v3247_v45  ;;  %v1189_v31 = vadd.f32 %v3259_v55, %v1188_v56  ;;  %v3277_v1 = vadd.f32 0.0001, %v3250_v42 }
 0x195   : > { %2360 = vrcp.f32 %v1184_v46  ;;  %v3279_v59 = vpop.eup %2348  ;;  %v1087_v12 = vsub.f32 %v3161_v47, %v3168_v49  ;;  %v1093_v25 = vsub.f32 %v3164_v35, %v3203_v23  ;;  %v1146_v57 = vmul.f32 1.442695, %v1097_v7 }
 0x196   : > { %2362 = vpow2.f32 %v1122_v48  ;;  %v1190_v14 = vadd.f32 %v3266_v3, %v1189_v31  ;;  %v1194_v53 = vadd.f32 %v3279_v59, %v3271_v8  ;;  %v1150_v13 = vmul.f32 1.442695, %v1099_v18 }
 0x197   : > { %2364 = vpow2.f32 %v1130_v63  ;;  %v3288_v4 = vpop.eup %2350  ;;  %v1078_v46 = vmax.f32 %v1077_v21, %v3269_v5  ;;  %v1101_v56 = vsub.f32 %v3181_v24, %v3227_v2  ;;  %v1095_v48 = vsub.f32 %v3175_v38, %v3203_v23 }
 0x198   : > { %2366 = vpow2.f32 %v1134_v62  ;;  %v3293_v47 = vpop.eup %2352  ;;  %v1195_v35 = vadd.f32 %v3288_v4, %v1194_v53  ;;  %v1126_v18 = vmul.f32 1.442695, %v1087_v12  ;;  %v1103_v24 = vsub.f32 %v3194_v41, %v3227_v2 }
 0x199   : > { %2368 = vrcp.f32 %v1190_v14  ;;  %v3299_v7 = vmax.f32 %v1078_v46, %v3277_v1  ;;  %v1138_v62 = vmul.f32 1.442695, %v1093_v25  ;;  %v1154_v53 = vmul.f32 1.442695, %v1101_v56 }
 0x19a   : > { %v3296_v49 = vpop.eup %2354  ;;  %2370 = vpow2.f32 %v1146_v57  ;;  %v1196_v21 = vadd.f32 %v3293_v47, %v1195_v35  ;;  %v1142_v12 = vmul.f32 1.442695, %v1095_v48  ;;  %v1158_v25 = vmul.f32 1.442695, %v1103_v24 }
 0x19b   : > { %v2357_v63 = vpop.eup %2356  ;;  %2372 = vpow2.f32 %v1150_v13  ;;  %v1105_v23 = vsub.f32 %v3255_v36, %v3299_v7 }
 0x19c   : > { %v3306_v31 = vpop.eup %2358  ;;  %v1201_v14 = vmul.f32 %v2357_v63, %v3183_v43  ;;  %v1204_v46 = vmul.f32 %v2357_v63, %v3191_v33  ;;  %v1206_v42 = vmul.f32 %v2357_v63, %v3198_v9  ;;  %v1208_v38 = vmul.f32 %v2357_v63, %v3205_v52  ;;  %v4130_v63 = vld [vmem:[#allocation2_spill] sm:$0xff] }
 0x19d   : > { %2374 = vrcp.f32 %v1196_v21  ;;  %v1179_v43 = vadd.f32 %v3306_v31, %v3296_v49 }
 0x19e   : > { %2376 = vpow2.f32 %v1126_v18  ;;  %v1240_v2 = vmul.f32 %v1201_v14, %v2670_v61  ;;  %v1242_v56 = vmul.f32 %v1204_v46, %v2682_v6  ;;  %v1244_v35 = vmul.f32 %v1206_v42, %v2694_v16 }
 0x19f   : > { %v2361_v41 = vpop.eup %2360  ;;  %2378 = vpow2.f32 %v1138_v62  ;;  %v1246_v48 = vmul.f32 %v1208_v38, %v2706_v26  ;;  %v1107_v14 = vsub.f32 %v3247_v45, %v3299_v7  ;;  %v1162_v46 = vmul.f32 1.442695, %v1105_v23 }
 0x1a0   : > { %v3317_v57 = vpop.eup %2362  ;;  %v1211_v33 = vmul.f32 %v2361_v41, %v3216_v58  ;;  %v1214_v9 = vmul.f32 %v2361_v41, %v3224_v28  ;;  %v1216_v52 = vmul.f32 %v2361_v41, %v3231_v11  ;;  %v1218_v36 = vmul.f32 %v2361_v41, %v3238_v29  ;;  %v4131_v58 = vld [vmem:[#allocation5_spill] sm:$0xff]  ;;  %v4132_v11 = vld [vmem:[#allocation10_spill] sm:$0xff] }
 0x1a1   : > { %v3323_v13 = vpop.eup %2364  ;;  %2380 = vpow2.f32 %v1154_v53  ;;  %v1180_v23 = vadd.f32 %v3317_v57, %v1179_v43 }
 0x1a2   : > { %v3328_v18 = vpop.eup %2366  ;;  %v1248_v21 = vmul.f32 %v1211_v33, %v4130_v63  ;;  %v1250_v24 = vmul.f32 %v1214_v9, %v4131_v58  ;;  %v1252_v28 = vmul.f32 %v1216_v52, %v2697_v19  ;;  %v1254_v62 = vmul.f32 %v1218_v36, %v4132_v11 }
 0x1a3   : > { %v2369_v29 = vpop.eup %2368  ;;  %2382 = vpow2.f32 %v1142_v12 }
 0x1a4   : > { %v3336_v42 = vpop.eup %2370  ;;  %v1221_v53 = vmul.f32 %v2369_v29, %v3244_v17  ;;  %v1224_v38 = vmul.f32 %v2369_v29, %v3252_v40  ;;  %v1226_v41 = vmul.f32 %v2369_v29, %v3259_v55  ;;  %v1228_v33 = vmul.f32 %v2369_v29, %v3266_v3  ;;  %v4134_v40 = vld [vmem:[#allocation17_spill] sm:$0xff] }
 0x1a5   : > { %v3342_v9 = vpop.eup %2372  ;;  %v1272_v52 = vadd.f32 %v1248_v21, %v1240_v2  ;;  %v1278_v36 = vadd.f32 %v1250_v24, %v1242_v56  ;;  %v1284_v39 = vadd.f32 %v1252_v28, %v1244_v35  ;;  %v1290_v34 = vadd.f32 %v1254_v62, %v1246_v48  ;;  %v4135_v55 = vld [vmem:[#allocation21_spill] sm:$0xff] }
 0x1a6   : > { %v1256_v45 = vmul.f32 %v1221_v53, %v4133_v51  ;;  %2384 = vpow2.f32 %v1158_v25  ;;  %v1185_v17 = vadd.f32 %v3328_v18, %v3323_v13  ;;  %v1258_v60 = vmul.f32 %v1224_v38, %v4134_v40  ;;  %v4136_v3 = vld [vmem:[#allocation25_spill] sm:$0xff]  ;;  %v4137_v38 = vld [vmem:[#allocation15_spill] sm:$0xff] }
 0x1a7   : > { %v2375_v12 = vpop.eup %2374  ;;  %v1260_v37 = vmul.f32 %v1226_v41, %v4135_v55  ;;  %v1262_v29 = vmul.f32 %v1228_v33, %v4136_v3  ;;  %v1191_v2 = vadd.f32 %v3342_v9, %v3336_v42  ;;  %v4138_v33 = vld [vmem:[#allocation19_spill] sm:$0xff]  ;;  %2386 = vpow2.f32 %v1162_v46 }
 0x1a8   : > { %v3353_v56 = vpop.eup %2376  ;;  %v1231_v35 = vmul.f32 %v2375_v12, %v3271_v8  ;;  %v1234_v25 = vmul.f32 %v2375_v12, %v3279_v59  ;;  %v1236_v43 = vmul.f32 %v2375_v12, %v3288_v4  ;;  %v1238_v48 = vmul.f32 %v2375_v12, %v3293_v47 }
 0x1a9   : > { %v3359_v21 = vpop.eup %2378  ;;  %v1273_v24 = vadd.f32 %v1272_v52, %v1256_v45  ;;  %v1279_v28 = vadd.f32 %v1278_v36, %v1258_v60  ;;  %v1285_v62 = vadd.f32 %v1284_v39, %v1260_v37  ;;  %v1291_v53 = vadd.f32 %v1290_v34, %v1262_v29 }
 0x1aa   : > { %v1264_v41 = vmul.f32 %v1231_v35, %v4137_v38  ;;  %v1266_v54 = vmul.f32 %v1234_v25, %v4138_v33  ;;  %v1268_v44 = vmul.f32 %v1236_v43, %v4139_v10  ;;  %v1270_v8 = vmul.f32 %v1238_v48, %v4140_v0 }
 0x1ab   : > { %v3365_v20 = vpop.eup %2380  ;;  %v1166_v59 = vmul.f32 1.442695, %v1107_v14  ;;  %v1186_v4 = vadd.f32 %v3359_v21, %v1185_v17  ;;  %v1181_v39 = vadd.f32 %v3353_v56, %v1180_v23  ;;  %v1109_v35 = vsub.f32 %v3269_v5, %v3299_v7 }
 0x1ac   : > { %v3368_v47 = vadd.f32 %v1273_v24, %v1264_v41  ;;  %v3370_v12 = vadd.f32 %v1279_v28, %v1266_v54  ;;  %v3372_v60 = vadd.f32 %v1285_v62, %v1268_v44  ;;  %v3374_v34 = vadd.f32 %v1291_v53, %v1270_v8 }
 0x1ad   : > { %v3376_v37 = vpop.eup %2382  ;;  %v1192_v52 = vadd.f32 %v3365_v20, %v1191_v2  ;;  %2388 = vpow2.f32 %v1166_v59  ;;  %v1111_v62 = vsub.f32 %v3277_v1, %v3299_v7 }
 0x1ae   : > { %v1296_v14 = vmul.f32 %v3368_v47, %v3368_v47  ;;  %v1298_v36 = vmul.f32 %v3370_v12, %v3370_v12  ;;  %v1300_v54 = vmul.f32 %v3372_v60, %v3372_v60  ;;  %v1302_v44 = vmul.f32 %v3374_v34, %v3374_v34 }
 0x1af   : > { %v1187_v45 = vadd.f32 %v3376_v37, %v1186_v4  ;;  %2390 = vrcp.f32 %v1181_v39  ;;  %v1170_v4 = vmul.f32 1.442695, %v1109_v35  ;;  %v1174_v39 = vmul.f32 1.442695, %v1111_v62 }
 0x1b0   : > { %v3389_v46 = vpop.eup %2384  ;;  %v1304_v23 = vrot.slane %v1296_v14, 4  ;;  %v1316_v17 = vrot.slane %v1298_v36, 4  ;;  %v1328_v29 = vrot.slane %v1300_v54, 4  ;;  %v1340_v2 = vrot.slane %v1302_v44, 4 }
 0x1b1   : > { %v1193_v25 = vadd.f32 %v3389_v46, %v1192_v52  ;;  %2392 = vrcp.f32 %v1187_v45  ;;  %v3396_v52 = vpop.eup %2386 }
 0x1b2   : > { %v1305_v43 = vadd.f32 %v1304_v23, %v1296_v14  ;;  %v1317_v48 = vadd.f32 %v1316_v17, %v1298_v36  ;;  %v1329_v24 = vadd.f32 %v1328_v29, %v1300_v54  ;;  %v1341_v28 = vadd.f32 %v1340_v2, %v1302_v44 }
 0x1b3   : > { %2394 = vrcp.f32 %v1193_v25 }
 0x1b4   : > { %v1306_v53 = vrot.slane %v1305_v43, 2  ;;  %v1318_v41 = vrot.slane %v1317_v48, 2  ;;  %v1330_v8 = vrot.slane %v1329_v24, 2  ;;  %v1342_v59 = vrot.slane %v1341_v28, 2 }
 0x1b5   : > { %2396 = vpow2.f32 %v1170_v4 }
 0x1b6   : > { %v1307_v32 = vadd.f32 %v1306_v53, %v1305_v43  ;;  %v1319_v27 = vadd.f32 %v1318_v41, %v1317_v48  ;;  %v1331_v5 = vadd.f32 %v1330_v8, %v1329_v24  ;;  %v1343_v22 = vadd.f32 %v1342_v59, %v1341_v28 }
 0x1b7   : > { %v3398_v23 = vpop.eup %2388  ;;  %2398 = vpow2.f32 %v1174_v39 }
 0x1b8   : > { %v1308_v14 = vrot.slane %v1307_v32, 1  ;;  %v1320_v36 = vrot.slane %v1319_v27, 1  ;;  %v1332_v54 = vrot.slane %v1331_v5, 1  ;;  %v1344_v44 = vrot.slane %v1343_v22, 1 }
 0x1b9   : > { %v2391_v17 = vpop.eup %2390 }
 0x1ba   : > { %v3400_v1 = vadd.f32 %v1308_v14, %v1307_v32  ;;  %v3402_v7 = vadd.f32 %v1320_v36, %v1319_v27  ;;  %v3404_v45 = vadd.f32 %v1332_v54, %v1331_v5  ;;  %v3406_v29 = vadd.f32 %v1344_v44, %v1343_v22  ;;  %v4142_v44 = vld [vmem:[#allocation6_spill] sm:$0xff] }
 0x1bb   : > { %v2393_v2 = vpop.eup %2392  ;;  %v3413_v32 = vadd.f32 %v3398_v23, %v3396_v52  ;;  %v1203_v27 = vmul.f32 %v2391_v17, %v3296_v49  ;;  %v1205_v35 = vmul.f32 %v2391_v17, %v3306_v31  ;;  %v1207_v43 = vmul.f32 %v2391_v17, %v3317_v57 }
 0x1bc   : > { %2400 = vrsqrt.f32 %v3400_v1  ;;  %v1209_v48 = vmul.f32 %v2391_v17, %v3353_v56  ;;  %vm1354_vm1 = vcmp.eq.f32.partialorder %v3400_v1, inf  ;;  %v1408_v24 = vadd.f32 1.0, %v3400_v1 }
 0x1bd   : > { %2402 = vrsqrt.f32 %v3402_v7  ;;  %v2395_v25 = vpop.eup %2394  ;;  %v1410_v28 = vadd.f32 1.0, %v3402_v7  ;;  %v1412_v62 = vadd.f32 1.0, %v3404_v45  ;;  %v1414_v49 = vadd.f32 1.0, %v3406_v29 }
 0x1be   : > { %2404 = vrsqrt.f32 %v3404_v45  ;;  %vm1368_vm2 = vcmp.eq.f32.partialorder %v3402_v7, inf  ;;  %v1371_v31 = vand.u32 2147483648, %v3402_v7  ;;  %v1213_v53 = vmul.f32 %v2393_v2, %v3323_v13 }
 0x1bf   : > { %2406 = vrsqrt.f32 %v3406_v29  ;;  %v1215_v57 = vmul.f32 %v2393_v2, %v3328_v18  ;;  %vm1382_vm3 = vcmp.eq.f32.partialorder %v3404_v45, inf  ;;  %v1416_v56 = vadd.f32 0.0001, %v1408_v24  ;;  %v3436_v36 = vpop.eup %2396  ;;  %v4141_v18 = vld [vmem:[#allocation3_spill] sm:$0xff]  ;;  %v4143_v24 = vld [vmem:[#allocation8_spill] sm:$0xff] }
 0x1c0   : > { %v1418_v41 = vadd.f32 0.0001, %v1410_v28  ;;  %v1420_v8 = vadd.f32 0.0001, %v1412_v62  ;;  %v1217_v59 = vmul.f32 %v2393_v2, %v3359_v21  ;;  %vm1356_vm4 = vcmp.eq.f32.partialorder %v3400_v1, 0.0  ;;  %v4145_v28 = vld [vmem:[#allocation7_spill] sm:$0xff] }
 0x1c1   : > { %v1422_v4 = vadd.f32 0.0001, %v1414_v49  ;;  %v1219_v5 = vmul.f32 %v2393_v2, %v3376_v37  ;;  %v1223_v39 = vmul.f32 %v2395_v25, %v3336_v42  ;;  %v1225_v14 = vmul.f32 %v2395_v25, %v3342_v9  ;;  %v3442_v17 = vpop.eup %2398  ;;  %v4144_v2 = vld [vmem:[#allocation4_spill] sm:$0xff] }
 0x1c2   : > { %vm1370_vm5 = vcmp.eq.f32.partialorder %v3402_v7, 0.0  ;;  %2408 = vrcp.f32 %v1416_v56  ;;  %v1227_v13 = vmul.f32 %v2395_v25, %v3365_v20  ;;  %v1241_v54 = vmul.f32 %v1203_v27, %v4141_v18  ;;  %v4146_v20 = vld [vmem:[#allocation9_spill] sm:$0xff] }
 0x1c3   : > { %v1243_v21 = vmul.f32 %v1205_v35, %v4142_v44  ;;  %2410 = vrcp.f32 %v1418_v41  ;;  %v1245_v37 = vmul.f32 %v1207_v43, %v4143_v24  ;;  %v1249_v42 = vmul.f32 %v1213_v53, %v4144_v2  ;;  %v4147_v44 = vld [vmem:[#allocation14_spill] sm:$0xff] }
 0x1c4   : > { %v1251_v9 = vmul.f32 %v1215_v57, %v4145_v28  ;;  %2412 = vrcp.f32 %v1420_v8  ;;  %v1229_v49 = vmul.f32 %v2395_v25, %v3389_v46  ;;  %v1247_v56 = vmul.f32 %v1209_v48, %v2711_v30  ;;  %v4148_v57 = vld [vmem:[#allocation18_spill] sm:$0xff] }
 0x1c5   : > { %v1253_v22 = vmul.f32 %v1217_v59, %v4146_v20  ;;  %2414 = vrcp.f32 %v1422_v4  ;;  %v1255_v41 = vmul.f32 %v1219_v5, %v4103_v15  ;;  %v1257_v43 = vmul.f32 %v1223_v39, %v4147_v44  ;;  %v4149_v8 = vld [vmem:[#allocation22_spill] sm:$0xff] }
 0x1c6   : > { %v2401_v62 = vpop.eup %2400  ;;  %v1259_v28 = vmul.f32 %v1225_v14, %v4148_v57  ;;  %v1261_v2 = vmul.f32 %v1227_v13, %v4149_v8  ;;  %v1275_v46 = vadd.f32 %v1249_v42, %v1241_v54  ;;  %v1281_v4 = vadd.f32 %v1251_v9, %v1243_v21 }
 0x1c7   : > { %v2403_v27 = vpop.eup %2402  ;;  %v1353_v35 = vmul.f32 %v2401_v62, %v3400_v1  ;;  %v1287_v62 = vadd.f32 %v1253_v22, %v1245_v37  ;;  %v1385_v39 = vand.u32 2147483648, %v3404_v45  ;;  %vm1396_vm6 = vcmp.eq.f32.partialorder %v3406_v29, inf }
 0x1c8   : > { %v2405_v24 = vpop.eup %2404  ;;  %v1367_v53 = vmul.f32 %v2403_v27, %v3402_v7  ;;  %v3465_v27 = vadd.f32 %v1275_v46, %v1257_v43  ;;  %v3471_v54 = vadd.f32 %v1281_v4, %v1259_v28  ;;  %v4150_v22 = vand.u32 2147483648, %v3400_v1 }
 0x1c9   : > { %v2407_v25 = vpop.eup %2406  ;;  %v1355_v48 = vsel %vm1354_vm1, %v3400_v1, %v1353_v35  ;;  %v1381_v59 = vmul.f32 %v2405_v24, %v3404_v45  ;;  %v3473_v21 = vadd.f32 %v1287_v62, %v1261_v2  ;;  %v1263_v42 = vmul.f32 %v1229_v49, %v4104_v50 }
 0x1ca   : > { %v1369_v5 = vsel %vm1368_vm2, %v3402_v7, %v1367_v53  ;;  %v1395_v14 = vmul.f32 %v2407_v25, %v3406_v29  ;;  %v1358_v24 = vsel %vm1356_vm4, %v4150_v22, %v1355_v48  ;;  %v1293_v9 = vadd.f32 %v1255_v41, %v1247_v56 }
 0x1cb   : > { %v1383_v13 = vsel %vm1382_vm3, %v3404_v45, %v1381_v59  ;;  %v1372_v35 = vsel %vm1370_vm5, %v1371_v31, %v1369_v5  ;;  %vm1384_vm7 = vcmp.eq.f32.partialorder %v3404_v45, 0.0  ;;  %v1399_v28 = vand.u32 2147483648, %v3406_v29 }
 0x1cc   : > { %v1397_v37 = vsel %vm1396_vm6, %v3406_v29, %v1395_v14  ;;  %v2409_v43 = vpop.eup %2408  ;;  %v1386_v2 = vsel %vm1384_vm7, %v1385_v39, %v1383_v13  ;;  %vm1398_vm8 = vcmp.eq.f32.partialorder %v3406_v29, 0.0  ;;  %v1198_v1 = vadd.f32 %v3436_v36, %v3413_v32 }
 0x1cd   : > { %v3488_v53 = vadd.f32 %v1293_v9, %v1263_v42  ;;  %v2411_v46 = vpop.eup %2410  ;;  %v1400_v25 = vsel %vm1398_vm8, %v1399_v28, %v1397_v37  ;;  %v1425_v49 = vmul.f32 %v2409_v43, %v1358_v24 }
 0x1ce   : > { %v2413_v56 = vpop.eup %2412  ;;  %v1429_v41 = vmul.f32 %v2411_v46, %v1372_v35  ;;  %v1199_v4 = vadd.f32 %v3442_v17, %v1198_v1 }
 0x1cf   : > { %v2415_v7 = vpop.eup %2414  ;;  %v1433_v31 = vmul.f32 %v2413_v56, %v1386_v2  ;;  %v1440_v45 = vmul.f32 %v1425_v49, %v3368_v47 }
 0x1d0   : > { %v1437_v48 = vmul.f32 %v2415_v7, %v1400_v25  ;;  %v1442_v59 = vmul.f32 %v1429_v41, %v3370_v12  ;;  %2416 = vrcp.f32 %v1199_v4 }
 0x1d1   : > { %v1444_v29 = vmul.f32 %v1433_v31, %v3372_v60  ;;  %v1448_v32 = vmul.f32 %v1440_v45, %v2670_v61  ;;  %v1456_v62 = vmul.f32 %v1440_v45, %v4130_v63  ;;  %v3497_v5 = vmul.f32 %v1440_v45, %v4133_v51 }
 0x1d2   : > { %v1446_v39 = vmul.f32 %v1437_v48, %v3374_v34  ;;  %v1450_v14 = vmul.f32 %v1442_v59, %v2682_v6  ;;  %v1458_v47 = vmul.f32 %v1442_v59, %v4131_v58  ;;  %v3503_v13 = vmul.f32 %v1442_v59, %v4134_v40 }
 0x1d3   : > { %v1452_v12 = vmul.f32 %v1444_v29, %v2694_v16  ;;  %v1460_v60 = vmul.f32 %v1444_v29, %v2697_v19  ;;  %v3508_v22 = vmul.f32 %v1444_v29, %v4135_v55  ;;  %v3511_v24 = vmul.f32 %v1440_v45, %v4137_v38 }
 0x1d4   : > { %v1454_v37 = vmul.f32 %v1446_v39, %v2706_v26  ;;  %v1462_v34 = vmul.f32 %v1446_v39, %v4132_v11  ;;  %v1470_v42 = vmul.f32 %v1446_v39, %v4136_v3  ;;  %v1474_v9 = vmul.f32 %v1442_v59, %v4138_v33 }
 0x1d5   : > { %v3518_v35 = vmul.f32 %v1444_v29, %v4139_v10  ;;  %v3521_v28 = vmul.f32 %v1446_v39, %v4140_v0  ;;  %v1480_v43 = vrot.slane %v1448_v32, 4  ;;  %v1492_v2 = vrot.slane %v1450_v14, 4 }
 0x1d6   : > { %v1504_v1 = vrot.slane %v1452_v12, 4  ;;  %v1516_v46 = vrot.slane %v1454_v37, 4  ;;  %v1528_v25 = vrot.slane %v1456_v62, 4  ;;  %v1540_v49 = vrot.slane %v1458_v47, 4 }
 0x1d7   : > { %v1481_v56 = vadd.f32 %v1480_v43, %v1448_v32  ;;  %v1493_v41 = vadd.f32 %v1492_v2, %v1450_v14  ;;  %v1552_v7 = vrot.slane %v1460_v60, 4  ;;  %v1564_v31 = vrot.slane %v1462_v34, 4 }
 0x1d8   : > { %v1505_v45 = vadd.f32 %v1504_v1, %v1452_v12  ;;  %v1517_v48 = vadd.f32 %v1516_v46, %v1454_v37  ;;  %v1529_v50 = vadd.f32 %v1528_v25, %v1456_v62  ;;  %v1541_v59 = vadd.f32 %v1540_v49, %v1458_v47 }
 0x1d9   : > { %v1482_v15 = vrot.slane %v1481_v56, 2  ;;  %v1494_v29 = vrot.slane %v1493_v41, 2  ;;  %v1553_v30 = vadd.f32 %v1552_v7, %v1460_v60  ;;  %v1565_v8 = vadd.f32 %v1564_v31, %v1462_v34 }
 0x1da   : > { %v1506_v39 = vrot.slane %v1505_v45, 2  ;;  %v1518_v20 = vrot.slane %v1517_v48, 2  ;;  %v1530_v57 = vrot.slane %v1529_v50, 2  ;;  %v1542_v44 = vrot.slane %v1541_v59, 2 }
 0x1db   : > { %v1483_v18 = vadd.f32 %v1482_v15, %v1481_v56  ;;  %v1495_v0 = vadd.f32 %v1494_v29, %v1493_v41  ;;  %v1554_v10 = vrot.slane %v1553_v30, 2  ;;  %v1566_v33 = vrot.slane %v1565_v8, 2 }
 0x1dc   : > { %v1507_v32 = vadd.f32 %v1506_v39, %v1505_v45  ;;  %v1519_v14 = vadd.f32 %v1518_v20, %v1517_v48  ;;  %v1531_v43 = vadd.f32 %v1530_v57, %v1529_v50  ;;  %v1543_v2 = vadd.f32 %v1542_v44, %v1541_v59 }
 0x1dd   : > { %v1484_v12 = vrot.slane %v1483_v18, 1  ;;  %v1496_v37 = vrot.slane %v1495_v0, 1  ;;  %v1555_v62 = vadd.f32 %v1554_v10, %v1553_v30  ;;  %v1567_v47 = vadd.f32 %v1566_v33, %v1565_v8 }
 0x1de   : > { %v1508_v1 = vrot.slane %v1507_v32, 1  ;;  %v1532_v46 = vrot.slane %v1531_v43, 1  ;;  %v1520_v60 = vrot.slane %v1519_v14, 1  ;;  %v1544_v34 = vrot.slane %v1543_v2, 1 }
 0x1df   : > { %v1485_v25 = vadd.f32 %v1484_v12, %v1483_v18  ;;  %v1497_v49 = vadd.f32 %v1496_v37, %v1495_v0  ;;  %v1556_v7 = vrot.slane %v1555_v62, 1  ;;  %v1568_v15 = vrot.slane %v1567_v47, 1 }
 0x1e0   : > { %v1509_v56 = vadd.f32 %v1508_v1, %v1507_v32  ;;  %v1533_v41 = vadd.f32 %v1532_v46, %v1531_v43  ;;  %v1576_v31 = vrot.slane %v3497_v5, 4  ;;  %v1588_v50 = vrot.slane %v3503_v13, 4 }
 0x1e1   : > { %v1600_v44 = vrot.slane %v3508_v22, 4  ;;  %v1612_v20 = vrot.slane %v1470_v42, 4  ;;  %v1624_v30 = vrot.slane %v3511_v24, 4  ;;  %v1636_v10 = vrot.slane %v1474_v9, 4 }
 0x1e2   : > { %v1577_v33 = vadd.f32 %v1576_v31, %v3497_v5  ;;  %v1589_v57 = vadd.f32 %v1588_v50, %v3503_v13  ;;  %v1648_v0 = vrot.slane %v3518_v35, 4  ;;  %v1660_v18 = vrot.slane %v3521_v28, 4 }
 0x1e3   : > { %v1601_v8 = vadd.f32 %v1600_v44, %v3508_v22  ;;  %v1613_v4 = vadd.f32 %v1612_v20, %v1470_v42  ;;  %v1625_v45 = vadd.f32 %v1624_v30, %v3511_v24  ;;  %v1637_v48 = vadd.f32 %v1636_v10, %v1474_v9  ;;  %v3535_v24 = vpop.eup %2416 }
 0x1e4   : > { %v1578_v59 = vrot.slane %v1577_v33, 2  ;;  %v1590_v29 = vrot.slane %v1589_v57, 2  ;;  %v1649_v39 = vadd.f32 %v1648_v0, %v3518_v35  ;;  %v1661_v32 = vadd.f32 %v1660_v18, %v3521_v28 }
 0x1e5   : > { %v1602_v43 = vrot.slane %v1601_v8, 2  ;;  %v1614_v5 = vrot.slane %v1613_v4, 2  ;;  %v1626_v12 = vrot.slane %v1625_v45, 2  ;;  %v1638_v13 = vrot.slane %v1637_v48, 2 }
 0x1e6   : > { %v1579_v37 = vadd.f32 %v1578_v59, %v1577_v33  ;;  %v1591_v1 = vadd.f32 %v1590_v29, %v1589_v57  ;;  %v1650_v46 = vrot.slane %v1649_v39, 2  ;;  %v1662_v31 = vrot.slane %v1661_v32, 2 }
 0x1e7   : > { %v1603_v50 = vadd.f32 %v1602_v43, %v1601_v8  ;;  %v1615_v22 = vadd.f32 %v1614_v5, %v1613_v4  ;;  %v1627_v42 = vadd.f32 %v1626_v12, %v1625_v45  ;;  %v1639_v44 = vadd.f32 %v1638_v13, %v1637_v48  ;;  %v4151_v43 = vld [vmem:[#allocation29_spill] sm:$0xff]  ;;  %v4152_v12 = vld [vmem:[#allocation36_spill] sm:$0xff] }
 0x1e8   : > { %v1580_v9 = vrot.slane %v1579_v37, 1  ;;  %v1592_v20 = vrot.slane %v1591_v1, 1  ;;  %v1651_v30 = vadd.f32 %v1650_v46, %v1649_v39  ;;  %v1663_v35 = vadd.f32 %v1662_v31, %v1661_v32  ;;  %v4153_v31 = vld [vmem:[#allocation30_spill] sm:$0xff] }
 0x1e9   : > { %v1604_v10 = vrot.slane %v1603_v50, 1  ;;  %v1616_v28 = vrot.slane %v1615_v22, 1  ;;  %v1628_v0 = vrot.slane %v1627_v42, 1  ;;  %v1640_v18 = vrot.slane %v1639_v44, 1 }
 0x1ea   : > { %v1521_v38 = vadd.f32 %v1520_v60, %v1519_v14  ;;  %v1545_v3 = vadd.f32 %v1544_v34, %v1543_v2  ;;  %v1652_v33 = vrot.slane %v1651_v30, 1  ;;  %v1664_v57 = vrot.slane %v1663_v35, 1  ;;  %v4154_v14 = vld [vmem:[#allocation43_spill] sm:$0xff] }
 0x1eb   : > { %v1557_v59 = vadd.f32 %v1556_v7, %v1555_v62  ;;  %v1569_v29 = vadd.f32 %v1568_v15, %v1567_v47  ;;  %v1581_v8 = vadd.f32 %v1580_v9, %v1579_v37  ;;  %v1593_v4 = vadd.f32 %v1592_v20, %v1591_v1  ;;  %v4155_v60 = vld [vmem:[#allocation47_spill] sm:$0xff]  ;;  %v4156_v62 = vld [vmem:[#allocation37_spill] sm:$0xff]  ;;  %v4157_v7 = vld [vmem:[#allocation44_spill] sm:$0xff] }
 0x1ec   : > { %v1629_v45 = vadd.f32 %v1628_v0, %v1627_v42  ;;  %v1641_v48 = vadd.f32 %v1640_v18, %v1639_v44  ;;  %v1672_v5 = vadd.f32 %v1485_v25, %v4151_v43  ;;  %v1674_v13 = vadd.f32 %v1497_v49, %v4152_v12  ;;  %v4158_v37 = vld [vmem:[#allocation48_spill] sm:$0xff]  ;;  %v4159_v42 = vld [vmem:[#allocation31_spill] sm:$0xff]  ;;  %v4160_v44 = vld [vmem:[#allocation38_spill] sm:$0xff] }
 0x1ed   : > { %v1605_v39 = vadd.f32 %v1604_v10, %v1603_v50  ;;  %v1617_v32 = vadd.f32 %v1616_v28, %v1615_v22  ;;  %v1653_v46 = vadd.f32 %v1652_v33, %v1651_v30  ;;  %v1680_v55 = vadd.f32 %v1533_v41, %v4153_v31  ;;  %v4161_v50 = vld [vmem:[#allocation32_spill] sm:$0xff]  ;;  %v4162_v9 = vld [vmem:[#allocation39_spill] sm:$0xff]  ;;  %v4164_v10 = vld [vmem:[#allocation49_spill] sm:$0xff] }
 0x1ee   : > { %v1665_v40 = vadd.f32 %v1664_v57, %v1663_v35  ;;  %v1676_v2 = vadd.f32 %v1509_v56, %v4154_v14  ;;  %v1678_v34 = vadd.f32 %v1521_v38, %v4155_v60  ;;  %v1682_v47 = vadd.f32 %v1545_v3, %v4156_v62  ;;  %v4163_v35 = vld [vmem:[#allocation45_spill] sm:$0xff]  ;;  %v4165_v28 = vld [vmem:[#allocation46_spill] sm:$0xff]  ;;  %v4166_v18 = vld [vmem:[#allocation51_spill] sm:$0xff] }
 0x1ef   : > { %v1684_v15 = vadd.f32 %v1557_v59, %v4157_v7  ;;  %v1686_v1 = vadd.f32 %v1569_v29, %v4158_v37  ;;  %v1688_v25 = vadd.f32 %v1581_v8, %v4159_v42  ;;  %v1690_v49 = vadd.f32 %v1593_v4, %v4160_v44 }
 0x1f0   : > { %v1696_v22 = vadd.f32 %v1629_v45, %v4161_v50  ;;  %v1698_v20 = vadd.f32 %v1641_v48, %v4162_v9  ;;  %v1704_v41 = vadd.f32 0.0001, %v1672_v5  ;;  %v1706_v30 = vadd.f32 0.0001, %v1674_v13 }
 0x1f1   : > { %v1692_v56 = vadd.f32 %v1605_v39, %v4163_v35  ;;  %v1694_v38 = vadd.f32 %v1617_v32, %v4164_v10  ;;  %v1700_v3 = vadd.f32 %v1653_v46, %v4165_v28  ;;  %v1712_v0 = vadd.f32 0.0001, %v1680_v55 }
 0x1f2   : > { %v1702_v33 = vadd.f32 %v1665_v40, %v4166_v18  ;;  %v1708_v57 = vadd.f32 0.0001, %v1676_v2  ;;  %v1714_v59 = vadd.f32 0.0001, %v1682_v47  ;;  %v1736_v29 = vmax.f32 %v1704_v41, %v1706_v30 }
 0x1f3   : > { %v1710_v8 = vadd.f32 0.0001, %v1678_v34  ;;  %v1720_v4 = vadd.f32 0.0001, %v1688_v25  ;;  %v1722_v43 = vadd.f32 0.0001, %v1690_v49  ;;  %v1233_v45 = vmul.f32 %v3535_v24, %v3396_v52 }
 0x1f4   : > { %v1716_v48 = vadd.f32 0.0001, %v1684_v15  ;;  %v3555_v5 = vadd.f32 0.0001, %v1696_v22  ;;  %v3557_v12 = vadd.f32 0.0001, %v1698_v20  ;;  %v1737_v13 = vmax.f32 %v1736_v29, %v1708_v57 }
 0x1f5   : > { %v1718_v39 = vadd.f32 0.0001, %v1686_v1  ;;  %v1724_v32 = vadd.f32 0.0001, %v1692_v56  ;;  %v1742_v55 = vmax.f32 %v1712_v0, %v1714_v59  ;;  %v1748_v46 = vmax.f32 %v1720_v4, %v1722_v43 }
 0x1f6   : > { %v3559_v40 = vadd.f32 0.0001, %v1700_v3  ;;  %v1738_v31 = vmax.f32 %v1737_v13, %v1710_v8  ;;  %v1754_v14 = vmax.f32 %v3555_v5, %v3557_v12  ;;  %v1235_v2 = vmul.f32 %v3535_v24, %v3398_v23 }
 0x1f7   : > { %v1726_v52 = vadd.f32 0.0001, %v1694_v38  ;;  %v3565_v60 = vadd.f32 0.0001, %v1702_v33  ;;  %v1743_v34 = vmax.f32 %v1742_v55, %v1716_v48  ;;  %v1749_v62 = vmax.f32 %v1748_v46, %v1724_v32 }
 0x1f8   : > { %v1755_v47 = vmax.f32 %v1754_v14, %v3559_v40  ;;  %v1760_v7 = vsub.f32 %v1704_v41, %v1738_v31  ;;  %v1762_v15 = vsub.f32 %v1706_v30, %v1738_v31  ;;  %v1764_v37 = vsub.f32 %v1708_v57, %v1738_v31 }
 0x1f9   : > { %v1744_v1 = vmax.f32 %v1743_v34, %v1718_v39  ;;  %v1750_v42 = vmax.f32 %v1749_v62, %v1726_v52  ;;  %v1766_v25 = vsub.f32 %v1710_v8, %v1738_v31  ;;  %v1237_v44 = vmul.f32 %v3535_v24, %v3436_v36  ;;  %v4167_v8 = vld [vmem:[#allocation16_spill] sm:$0xff] }
 0x1fa   : > { %v3571_v49 = vmax.f32 %v1755_v47, %v3565_v60  ;;  %v1792_v23 = vmul.f32 1.442695, %v1760_v7  ;;  %v1796_v50 = vmul.f32 1.442695, %v1762_v15  ;;  %v1800_v22 = vmul.f32 1.442695, %v1764_v37 }
 0x1fb   : > { %v1768_v9 = vsub.f32 %v1712_v0, %v1744_v1  ;;  %v1770_v20 = vsub.f32 %v1714_v59, %v1744_v1  ;;  %v1772_v35 = vsub.f32 %v1716_v48, %v1744_v1  ;;  %v1774_v56 = vsub.f32 %v1718_v39, %v1744_v1  ;;  %v4168_v48 = vld [vmem:[#allocation20_spill] sm:$0xff] }
 0x1fc   : > { %v1776_v10 = vsub.f32 %v1720_v4, %v1750_v42  ;;  %v1778_v41 = vsub.f32 %v1722_v43, %v1750_v42  ;;  %v1780_v30 = vsub.f32 %v1724_v32, %v1750_v42  ;;  %v1782_v38 = vsub.f32 %v1726_v52, %v1750_v42  ;;  %v4170_v32 = vld [vmem:[#allocation28_spill] sm:$0xff] }
 0x1fd   : > { %v1784_v28 = vsub.f32 %v3555_v5, %v3571_v49  ;;  %v1786_v36 = vsub.f32 %v3557_v12, %v3571_v49  ;;  %v1788_v3 = vsub.f32 %v3559_v40, %v3571_v49  ;;  %v1790_v18 = vsub.f32 %v3565_v60, %v3571_v49  ;;  %v4169_v12 = vld [vmem:[#allocation24_spill] sm:$0xff] }
 0x1fe   : > { %2418 = vpow2.f32 %v1792_v23  ;;  %v1804_v0 = vmul.f32 1.442695, %v1766_v25  ;;  %v1808_v33 = vmul.f32 1.442695, %v1768_v9  ;;  %v1239_v57 = vmul.f32 %v3535_v24, %v3442_v17 }
 0x1ff   : > { %2420 = vpow2.f32 %v1796_v50  ;;  %v1812_v59 = vmul.f32 1.442695, %v1770_v20  ;;  %v1816_v29 = vmul.f32 1.442695, %v1772_v35  ;;  %v1265_v4 = vmul.f32 %v1233_v45, %v4167_v8 }
 0x200   : > { %2422 = vpow2.f32 %v1800_v22  ;;  %v1820_v43 = vmul.f32 1.442695, %v1774_v56  ;;  %v1267_v5 = vmul.f32 %v1235_v2, %v4168_v48  ;;  %v1269_v13 = vmul.f32 %v1237_v44, %v4169_v12 }
 0x201   : > { %2424 = vpow2.f32 %v1804_v0  ;;  %v1824_v39 = vmul.f32 1.442695, %v1776_v10  ;;  %v1271_v55 = vmul.f32 %v1239_v57, %v4170_v32  ;;  %v3588_v46 = vadd.f32 %v3465_v27, %v1265_v4 }
 0x202   : > { %2426 = vpow2.f32 %v1808_v33  ;;  %v1828_v17 = vmul.f32 1.442695, %v1778_v41  ;;  %v3591_v24 = vadd.f32 %v3471_v54, %v1267_v5  ;;  %v3594_v45 = vadd.f32 %v3473_v21, %v1269_v13 }
 0x203   : > { %2428 = vpow2.f32 %v1812_v59  ;;  %v1832_v40 = vmul.f32 1.442695, %v1780_v30  ;;  %v3597_v31 = vadd.f32 %v3488_v53, %v1271_v55  ;;  %v1297_v14 = vmul.f32 %v3588_v46, %v3588_v46 }
 0x204   : > { %2430 = vpow2.f32 %v1816_v29  ;;  %v1836_v2 = vmul.f32 1.442695, %v1782_v38  ;;  %v1299_v27 = vmul.f32 %v3591_v24, %v3591_v24  ;;  %v1301_v54 = vmul.f32 %v3594_v45, %v3594_v45 }
 0x205   : > { %2432 = vpow2.f32 %v1820_v43  ;;  %v1840_v52 = vmul.f32 1.442695, %v1784_v28  ;;  %v1303_v21 = vmul.f32 %v3597_v31, %v3597_v31  ;;  %v1310_v60 = vrot.slane %v1297_v14, 4 }
 0x206   : > { %2434 = vpow2.f32 %v1824_v39  ;;  %v1844_v53 = vmul.f32 1.442695, %v1786_v36  ;;  %v1322_v34 = vrot.slane %v1299_v27, 4  ;;  %v1334_v62 = vrot.slane %v1301_v54, 4 }
 0x207   : > { %2436 = vpow2.f32 %v1828_v17  ;;  %v1311_v7 = vadd.f32 %v1310_v60, %v1297_v14  ;;  %v1346_v15 = vrot.slane %v1303_v21, 4  ;;  %v1848_v1 = vmul.f32 1.442695, %v1788_v3 }
 0x208   : > { %v3607_v47 = vpop.eup %2418  ;;  %2438 = vpow2.f32 %v1832_v40  ;;  %v1323_v42 = vadd.f32 %v1322_v34, %v1299_v27  ;;  %v1335_v25 = vadd.f32 %v1334_v62, %v1301_v54  ;;  %v1852_v9 = vmul.f32 1.442695, %v1790_v18 }
 0x209   : > { %v3609_v37 = vpop.eup %2420  ;;  %2440 = vpow2.f32 %v1836_v2  ;;  %v1312_v23 = vrot.slane %v1311_v7, 2  ;;  %v1347_v50 = vadd.f32 %v1346_v15, %v1303_v21 }
 0x20a   : > { %v3611_v44 = vpop.eup %2422  ;;  %2442 = vpow2.f32 %v1840_v52  ;;  %v1856_v49 = vadd.f32 %v3609_v37, %v3607_v47  ;;  %v1324_v20 = vrot.slane %v1323_v42, 2  ;;  %v1336_v35 = vrot.slane %v1335_v25, 2 }
 0x20b   : > { %v2425_v22 = vpop.eup %2424  ;;  %2444 = vpow2.f32 %v1844_v53  ;;  %v1313_v41 = vadd.f32 %v1312_v23, %v1311_v7  ;;  %v1348_v30 = vrot.slane %v1347_v50, 2 }
 0x20c   : > { %v3615_v56 = vpop.eup %2426  ;;  %v1857_v10 = vadd.f32 %v3611_v44, %v1856_v49  ;;  %2446 = vpow2.f32 %v1848_v1  ;;  %v1325_v28 = vadd.f32 %v1324_v20, %v1323_v42  ;;  %v1337_v36 = vadd.f32 %v1336_v35, %v1335_v25 }
 0x20d   : > { %v3618_v38 = vpop.eup %2428  ;;  %v1314_v18 = vrot.slane %v1313_v41, 1  ;;  %v1349_v57 = vadd.f32 %v1348_v30, %v1347_v50  ;;  %2448 = vpow2.f32 %v1852_v9 }
 0x20e   : > { %v3620_v3 = vpop.eup %2430  ;;  %v1858_v0 = vadd.f32 %v2425_v22, %v1857_v10  ;;  %v1862_v33 = vadd.f32 %v3618_v38, %v3615_v56  ;;  %v1326_v29 = vrot.slane %v1325_v28, 1  ;;  %v1338_v4 = vrot.slane %v1337_v36, 1 }
 0x20f   : > { %v3624_v59 = vpop.eup %2432  ;;  %v3629_v13 = vadd.f32 %v1314_v18, %v1313_v41  ;;  %v1350_v40 = vrot.slane %v1349_v57, 1 }
 0x210   : > { %v3626_v43 = vpop.eup %2434  ;;  %v1863_v5 = vadd.f32 %v3620_v3, %v1862_v33  ;;  %2450 = vrcp.f32 %v1858_v0  ;;  %v3633_v55 = vadd.f32 %v1326_v29, %v1325_v28  ;;  %v3635_v17 = vadd.f32 %v1338_v4, %v1337_v36 }
 0x211   : > { %v3631_v39 = vpop.eup %2436  ;;  %2452 = vrsqrt.f32 %v3629_v13  ;;  %v3651_v53 = vadd.f32 %v1350_v40, %v1349_v57  ;;  %v1409_v15 = vadd.f32 1.0, %v3629_v13  ;;  %vm1361_vm9 = vcmp.eq.f32.partialorder %v3629_v13, inf }
 0x212   : > { %v3637_v14 = vpop.eup %2438  ;;  %v1864_v2 = vadd.f32 %v3624_v59, %v1863_v5  ;;  %v1868_v27 = vadd.f32 %v3631_v39, %v3626_v43  ;;  %2454 = vrsqrt.f32 %v3633_v55  ;;  %v1411_v42 = vadd.f32 1.0, %v3633_v55 }
 0x213   : > { %v3643_v54 = vpop.eup %2440  ;;  %vm1363_vm10 = vcmp.eq.f32.partialorder %v3629_v13, 0.0  ;;  %v1364_v50 = vand.u32 2147483648, %v3629_v13  ;;  %vm1375_vm11 = vcmp.eq.f32.partialorder %v3633_v55, inf  ;;  %v1417_v9 = vadd.f32 0.0001, %v1409_v15 }
 0x214   : > { %v3646_v52 = vpop.eup %2442  ;;  %v1869_v21 = vadd.f32 %v3637_v14, %v1868_v27  ;;  %2456 = vrcp.f32 %v1864_v2  ;;  %v1378_v28 = vand.u32 2147483648, %v3633_v55  ;;  %v1413_v36 = vadd.f32 1.0, %v3635_v17 }
 0x215   : > { %v3649_v60 = vpop.eup %2444  ;;  %2458 = vrsqrt.f32 %v3635_v17  ;;  %v1419_v0 = vadd.f32 0.0001, %v1411_v42  ;;  %vm1377_vm12 = vcmp.eq.f32.partialorder %v3633_v55, 0.0  ;;  %vm1389_vm13 = vcmp.eq.f32.partialorder %v3635_v17, inf }
 0x216   : > { %v1870_v34 = vadd.f32 %v3643_v54, %v1869_v21  ;;  %v1874_v62 = vadd.f32 %v3649_v60, %v3646_v52  ;;  %v3657_v7 = vpop.eup %2446  ;;  %v1415_v4 = vadd.f32 1.0, %v3651_v53  ;;  %v1392_v2 = vand.u32 2147483648, %v3635_v17 }
 0x217   : > { %v3662_v25 = vpop.eup %2448  ;;  %v1421_v27 = vadd.f32 0.0001, %v1413_v36  ;;  %vm1391_vm14 = vcmp.eq.f32.partialorder %v3635_v17, 0.0  ;;  %vm1403_vm15 = vcmp.eq.f32.partialorder %v3651_v53, inf  ;;  %vm1405_vm0 = vcmp.eq.f32.partialorder %v3651_v53, 0.0 }
 0x218   : > { %v1875_v1 = vadd.f32 %v3657_v7, %v1874_v62  ;;  %2460 = vrcp.f32 %v1870_v34 }
 0x219   : > { %2462 = vrsqrt.f32 %v3651_v53 }
 0x21a   : > { %v2451_v49 = vpop.eup %2450  ;;  %v1876_v23 = vadd.f32 %v3662_v25, %v1875_v1  ;;  %v1423_v1 = vadd.f32 0.0001, %v1415_v4 }
 0x21b   : > { %v1881_v20 = vmul.f32 %v2451_v49, %v3607_v47  ;;  %v1884_v35 = vmul.f32 %v2451_v49, %v3609_v37  ;;  %v1886_v10 = vmul.f32 %v2451_v49, %v3611_v44  ;;  %v1888_v41 = vmul.f32 %v2451_v49, %v2425_v22  ;;  %v2453_v30 = vpop.eup %2452 }
 0x21c   : > { %2464 = vrcp.f32 %v1876_v23  ;;  %v2455_v33 = vpop.eup %2454  ;;  %v1360_v44 = vmul.f32 %v2453_v30, %v3629_v13 }
 0x21d   : > { %v1920_v18 = vmul.f32 %v1881_v20, %v2670_v61  ;;  %v1922_v57 = vmul.f32 %v1884_v35, %v2682_v6  ;;  %v1924_v29 = vmul.f32 %v1886_v10, %v2694_v16  ;;  %v1926_v47 = vmul.f32 %v1888_v41, %v2706_v26  ;;  %v4171_v20 = vld [vmem:[#allocation17_spill] sm:$0xff] }
 0x21e   : > { %v2457_v37 = vpop.eup %2456  ;;  %v1374_v22 = vmul.f32 %v2455_v33, %v3633_v55  ;;  %2466 = vrcp.f32 %v1417_v9  ;;  %v1362_v40 = vsel %vm1361_vm9, %v3629_v13, %v1360_v44  ;;  %v4172_v10 = vld [vmem:[#allocation21_spill] sm:$0xff] }
 0x21f   : > { %v2459_v5 = vpop.eup %2458  ;;  %v1891_v61 = vmul.f32 %v2457_v37, %v3615_v56  ;;  %v1894_v6 = vmul.f32 %v2457_v37, %v3618_v38  ;;  %v1896_v16 = vmul.f32 %v2457_v37, %v3620_v3  ;;  %v1898_v26 = vmul.f32 %v2457_v37, %v3624_v59  ;;  %v4173_v41 = vld [vmem:[#allocation25_spill] sm:$0xff]  ;;  %v4174_v37 = vld [vmem:[#allocation15_spill] sm:$0xff] }
 0x220   : > { %2468 = vrcp.f32 %v1419_v0  ;;  %v1365_v3 = vsel %vm1363_vm10, %v1364_v50, %v1362_v40  ;;  %v1376_v59 = vsel %vm1375_vm11, %v3633_v55, %v1374_v22  ;;  %v1388_v15 = vmul.f32 %v2459_v5, %v3635_v17  ;;  %v4175_v22 = vld [vmem:[#allocation19_spill] sm:$0xff] }
 0x221   : > { %v1928_v21 = vmul.f32 %v1891_v61, %v4130_v63  ;;  %v1930_v34 = vmul.f32 %v1894_v6, %v4131_v58  ;;  %v1932_v56 = vmul.f32 %v1896_v16, %v2697_v19  ;;  %v1934_v38 = vmul.f32 %v1898_v26, %v4132_v11  ;;  %v4176_v5 = vld [vmem:[#allocation23_spill] sm:$0xff] }
 0x222   : > { %v2461_v62 = vpop.eup %2460  ;;  %2470 = vrcp.f32 %v1421_v27  ;;  %v4177_v6 = vld [vmem:[#allocation27_spill] sm:$0xff] }
 0x223   : > { %v2463_v42 = vpop.eup %2462  ;;  %v1901_v63 = vmul.f32 %v2461_v62, %v3626_v43  ;;  %v1904_v58 = vmul.f32 %v2461_v62, %v3631_v39  ;;  %v1906_v19 = vmul.f32 %v2461_v62, %v3637_v14  ;;  %v1908_v11 = vmul.f32 %v2461_v62, %v3643_v54 }
 0x224   : > { %v1952_v13 = vadd.f32 %v1928_v21, %v1920_v18  ;;  %v1958_v49 = vadd.f32 %v1930_v34, %v1922_v57  ;;  %v1964_v23 = vadd.f32 %v1932_v56, %v1924_v29  ;;  %v1970_v50 = vadd.f32 %v1934_v38, %v1926_v47 }
 0x225   : > { %v1936_v9 = vmul.f32 %v1901_v63, %v4133_v51  ;;  %v1938_v35 = vmul.f32 %v1904_v58, %v4171_v20  ;;  %v1940_v43 = vmul.f32 %v1906_v19, %v4172_v10  ;;  %v1942_v39 = vmul.f32 %v1908_v11, %v4173_v41  ;;  %v4182_v20 = vld [vmem:[#allocation7_spill] sm:$0xff]  ;;  %v4183_v10 = vld [vmem:[#allocation18_spill] sm:$0xff] }
 0x226   : > { %v2465_v30 = vpop.eup %2464  ;;  %v1379_v14 = vsel %vm1377_vm12, %v1378_v28, %v1376_v59  ;;  %v1390_v54 = vsel %vm1389_vm13, %v3635_v17, %v1388_v15  ;;  %v1402_v36 = vmul.f32 %v2463_v42, %v3651_v53  ;;  %2472 = vrcp.f32 %v1423_v1  ;;  %v4178_v15 = vld [vmem:[#allocation3_spill] sm:$0xff]  ;;  %v4179_v42 = vld [vmem:[#allocation4_spill] sm:$0xff] }
 0x227   : > { %v1911_v0 = vmul.f32 %v2465_v30, %v3646_v52  ;;  %v1914_v51 = vmul.f32 %v2465_v30, %v3649_v60  ;;  %v1916_v33 = vmul.f32 %v2465_v30, %v3657_v7  ;;  %v1918_v18 = vmul.f32 %v2465_v30, %v3662_v25 }
 0x228   : > { %v2467_v57 = vpop.eup %2466  ;;  %v1953_v29 = vadd.f32 %v1952_v13, %v1936_v9  ;;  %v1959_v47 = vadd.f32 %v1958_v49, %v1938_v35  ;;  %v1965_v55 = vadd.f32 %v1964_v23, %v1940_v43  ;;  %v1971_v28 = vadd.f32 %v1970_v50, %v1942_v39  ;;  %v4181_v50 = vld [vmem:[#allocation6_spill] sm:$0xff] }
 0x229   : > { %v1944_v44 = vmul.f32 %v1911_v0, %v4174_v37  ;;  %v1946_v4 = vmul.f32 %v1914_v51, %v4175_v22  ;;  %v1948_v61 = vmul.f32 %v1916_v33, %v4176_v5  ;;  %v1950_v16 = vmul.f32 %v1918_v18, %v4177_v6  ;;  %v4185_v6 = vld [vmem:[#allocation9_spill] sm:$0xff] }
 0x22a   : > { %v2469_v52 = vpop.eup %2468  ;;  %v1406_v60 = vand.u32 2147483648, %v3651_v53  ;;  %v1427_v7 = vmul.f32 %v2467_v57, %v1365_v3  ;;  %v1393_v21 = vsel %vm1391_vm14, %v1392_v2, %v1390_v54  ;;  %v1404_v34 = vsel %vm1403_vm15, %v3651_v53, %v1402_v36  ;;  %v4184_v53 = vld [vmem:[#allocation8_spill] sm:$0xff] }
 0x22b   : > { %v3728_v25 = vadd.f32 %v1953_v29, %v1944_v44  ;;  %v3730_v26 = vadd.f32 %v1959_v47, %v1946_v4  ;;  %v3732_v40 = vadd.f32 %v1965_v55, %v1948_v61  ;;  %v3734_v27 = vadd.f32 %v1971_v28, %v1950_v16 }
 0x22c   : > { %v1431_v56 = vmul.f32 %v2469_v52, %v1379_v14  ;;  %v1441_v38 = vmul.f32 %v1427_v7, %v3588_v46  ;;  %v4180_v46 = vld [vmem:[#allocation14_spill] sm:$0xff]  ;;  %v2471_v23 = vpop.eup %2470  ;;  %v1407_v54 = vsel %vm1405_vm0, %v1406_v60, %v1404_v34 }
 0x22d   : > { %v1976_v62 = vmul.f32 %v3728_v25, %v3728_v25  ;;  %v1978_v3 = vmul.f32 %v3730_v26, %v3730_v26  ;;  %v1980_v59 = vmul.f32 %v3732_v40, %v3732_v40  ;;  %v1982_v17 = vmul.f32 %v3734_v27, %v3734_v27  ;;  %v4186_v52 = vld [vmem:[#allocation22_spill] sm:$0xff] }
 0x22e   : > { %v1443_v2 = vmul.f32 %v1431_v56, %v3591_v24  ;;  %v1449_v1 = vmul.f32 %v1441_v38, %v4178_v15  ;;  %v3753_v63 = vmul.f32 %v1441_v38, %v4179_v42  ;;  %v3756_v58 = vmul.f32 %v1441_v38, %v4180_v46 }
 0x22f   : > { %v1984_v19 = vrot.slane %v1976_v62, 4  ;;  %v1996_v11 = vrot.slane %v1978_v3, 4  ;;  %v2008_v13 = vrot.slane %v1980_v59, 4  ;;  %v2020_v49 = vrot.slane %v1982_v17, 4 }
 0x230   : > { %v1451_v9 = vmul.f32 %v1443_v2, %v4181_v50  ;;  %v3760_v35 = vmul.f32 %v1443_v2, %v4182_v20  ;;  %v3763_v24 = vmul.f32 %v1443_v2, %v4183_v10  ;;  %v3766_v43 = vmul.f32 %v1441_v38, %v4167_v8  ;;  %v2473_v29 = vpop.eup %2472 }
 0x231   : > { %v1985_v41 = vadd.f32 %v1984_v19, %v1976_v62  ;;  %v1997_v39 = vadd.f32 %v1996_v11, %v1978_v3  ;;  %v2009_v30 = vadd.f32 %v2008_v13, %v1980_v59  ;;  %v2021_v14 = vadd.f32 %v2020_v49, %v1982_v17  ;;  %v4187_v11 = vld [vmem:[#allocation11_spill] sm:$0xff]  ;;  %v4188_v49 = vld [vmem:[#allocation12_spill] sm:$0xff] }
 0x232   : > { %v1435_v36 = vmul.f32 %v2471_v23, %v1393_v21  ;;  %v3771_v0 = vmul.f32 %v1443_v2, %v4168_v48  ;;  %v1486_v55 = vrot.slane %v1449_v1, 4  ;;  %v1498_v28 = vrot.slane %v1451_v9, 4 }
 0x233   : > { %v1986_v51 = vrot.slane %v1985_v41, 2  ;;  %v1998_v33 = vrot.slane %v1997_v39, 2  ;;  %v2010_v18 = vrot.slane %v2009_v30, 2  ;;  %v2022_v57 = vrot.slane %v2021_v14, 2 }
 0x234   : > { %v1445_v47 = vmul.f32 %v1435_v36, %v3594_v45  ;;  %v1439_v5 = vmul.f32 %v2473_v29, %v1407_v54  ;;  %v1487_v62 = vadd.f32 %v1486_v55, %v1449_v1  ;;  %v1499_v3 = vadd.f32 %v1498_v28, %v1451_v9 }
 0x235   : > { %v1987_v37 = vadd.f32 %v1986_v51, %v1985_v41  ;;  %v1999_v44 = vadd.f32 %v1998_v33, %v1997_v39  ;;  %v2011_v22 = vadd.f32 %v2010_v18, %v2009_v30  ;;  %v2023_v4 = vadd.f32 %v2022_v57, %v2021_v14  ;;  %v4189_v41 = vld [vmem:[#allocation26_spill] sm:$0xff] }
 0x236   : > { %v1453_v61 = vmul.f32 %v1445_v47, %v4184_v53  ;;  %v3776_v16 = vmul.f32 %v1445_v47, %v4185_v6  ;;  %v3779_v60 = vmul.f32 %v1445_v47, %v4186_v52  ;;  %v1447_v45 = vmul.f32 %v1439_v5, %v3597_v31 }
 0x237   : > { %v1988_v7 = vrot.slane %v1987_v37, 1  ;;  %v2000_v21 = vrot.slane %v1999_v44, 1  ;;  %v2012_v34 = vrot.slane %v2011_v22, 1  ;;  %v2024_v56 = vrot.slane %v2023_v4, 1 }
 0x238   : > { %v3783_v38 = vmul.f32 %v1445_v47, %v4169_v12  ;;  %v1455_v13 = vmul.f32 %v1447_v45, %v4187_v11  ;;  %v3795_v23 = vmul.f32 %v1447_v45, %v4188_v49  ;;  %v3798_v31 = vmul.f32 %v1447_v45, %v4189_v41 }
 0x239   : > { %v3785_v59 = vadd.f32 %v1988_v7, %v1987_v37  ;;  %v3787_v17 = vadd.f32 %v2000_v21, %v1999_v44  ;;  %v3789_v2 = vadd.f32 %v2012_v34, %v2011_v22  ;;  %v3791_v19 = vadd.f32 %v2024_v56, %v2023_v4 }
 0x23a   : > { %v3801_v39 = vmul.f32 %v1447_v45, %v4170_v32  ;;  %v1488_v1 = vrot.slane %v1487_v62, 2  ;;  %v1500_v9 = vrot.slane %v1499_v3, 2  ;;  %v1534_v30 = vrot.slane %v3753_v63, 4 }
 0x23b   : > { %2474 = vrsqrt.f32 %v3785_v59  ;;  %v2037_v14 = vand.u32 2147483648, %v3785_v59  ;;  %v2051_v54 = vand.u32 2147483648, %v3787_v17  ;;  %vm2034_vm1 = vcmp.eq.f32.partialorder %v3785_v59, inf }
 0x23c   : > { %2476 = vrsqrt.f32 %v3787_v17  ;;  %v2088_v36 = vadd.f32 1.0, %v3785_v59  ;;  %v2090_v51 = vadd.f32 1.0, %v3787_v17  ;;  %v2092_v33 = vadd.f32 1.0, %v3789_v2 }
 0x23d   : > { %2478 = vrsqrt.f32 %v3789_v2  ;;  %v2094_v18 = vadd.f32 1.0, %v3791_v19  ;;  %vm2048_vm2 = vcmp.eq.f32.partialorder %v3787_v17, inf  ;;  %v1489_v57 = vadd.f32 %v1488_v1, %v1487_v62 }
 0x23e   : > { %2480 = vrsqrt.f32 %v3791_v19  ;;  %v1501_v29 = vadd.f32 %v1500_v9, %v1499_v3  ;;  %v1510_v47 = vrot.slane %v1453_v61, 4  ;;  %v1522_v55 = vrot.slane %v1455_v13, 4 }
 0x23f   : > { %vm2036_vm3 = vcmp.eq.f32.partialorder %v3785_v59, 0.0  ;;  %vm2062_vm4 = vcmp.eq.f32.partialorder %v3789_v2, inf  ;;  %v2096_v28 = vadd.f32 0.0001, %v2088_v36  ;;  %v2098_v37 = vadd.f32 0.0001, %v2090_v51 }
 0x240   : > { %v2100_v44 = vadd.f32 0.0001, %v2092_v33  ;;  %v1535_v22 = vadd.f32 %v1534_v30, %v3753_v63  ;;  %vm2050_vm5 = vcmp.eq.f32.partialorder %v3787_v17, 0.0  ;;  %v2065_v4 = vand.u32 2147483648, %v3789_v2 }
 0x241   : > { %vm2076_vm6 = vcmp.eq.f32.partialorder %v3791_v19, inf  ;;  %v2102_v5 = vadd.f32 0.0001, %v2094_v18  ;;  %v1511_v7 = vadd.f32 %v1510_v47, %v1453_v61  ;;  %2482 = vrcp.f32 %v2096_v28 }
 0x242   : > { %v1523_v21 = vadd.f32 %v1522_v55, %v1455_v13  ;;  %v1536_v34 = vrot.slane %v1535_v22, 2  ;;  %v1546_v56 = vrot.slane %v3760_v35, 4  ;;  %vm2064_vm7 = vcmp.eq.f32.partialorder %v3789_v2, 0.0 }
 0x243   : > { %vm2078_vm8 = vcmp.eq.f32.partialorder %v3791_v19, 0.0  ;;  %2484 = vrcp.f32 %v2098_v37  ;;  %v1490_v45 = vrot.slane %v1489_v57, 1  ;;  %v1502_v63 = vrot.slane %v1501_v29, 1 }
 0x244   : > { %v1512_v62 = vrot.slane %v1511_v7, 2  ;;  %2486 = vrcp.f32 %v2100_v44  ;;  %v1524_v1 = vrot.slane %v1523_v21, 2  ;;  %v1537_v9 = vadd.f32 %v1536_v34, %v1535_v22 }
 0x245   : > { %v2475_v3 = vpop.eup %2474  ;;  %v1547_v30 = vadd.f32 %v1546_v56, %v3760_v35  ;;  %2488 = vrcp.f32 %v2102_v5  ;;  %v1558_v51 = vrot.slane %v3776_v16, 4  ;;  %v2079_v34 = vand.u32 2147483648, %v3791_v19 }
 0x246   : > { %v2477_v61 = vpop.eup %2476  ;;  %v2033_v13 = vmul.f32 %v2475_v3, %v3785_v59  ;;  %v1513_v36 = vadd.f32 %v1512_v62, %v1511_v7  ;;  %v3829_v47 = vadd.f32 %v1524_v1, %v1523_v21  ;;  %v1538_v55 = vrot.slane %v1537_v9, 1 }
 0x247   : > { %v2479_v33 = vpop.eup %2478  ;;  %v2047_v18 = vmul.f32 %v2477_v61, %v3787_v17  ;;  %v1548_v28 = vrot.slane %v1547_v30, 2  ;;  %v1559_v5 = vadd.f32 %v1558_v51, %v3776_v16  ;;  %v3841_v56 = vadd.f32 %v1490_v45, %v1489_v57 }
 0x248   : > { %v2481_v37 = vpop.eup %2480  ;;  %v2035_v44 = vsel %vm2034_vm1, %v3785_v59, %v2033_v13  ;;  %v2061_v35 = vmul.f32 %v2479_v33, %v3789_v2  ;;  %v1514_v22 = vrot.slane %v1513_v36, 1  ;;  %v3848_v1 = vadd.f32 %v1502_v63, %v1501_v29 }
 0x249   : > { %v2049_v7 = vsel %vm2048_vm2, %v3787_v17, %v2047_v18  ;;  %v2075_v21 = vmul.f32 %v2481_v37, %v3791_v19  ;;  %v2038_v62 = vsel %vm2036_vm3, %v2037_v14, %v2035_v44  ;;  %v1526_v16 = vrot.slane %v3829_v47, 1 }
 0x24a   : > { %v2063_v3 = vsel %vm2062_vm4, %v3789_v2, %v2061_v35  ;;  %v2052_v61 = vsel %vm2050_vm5, %v2051_v54, %v2049_v7  ;;  %v3856_v57 = vadd.f32 %v1514_v22, %v1513_v36  ;;  %v3858_v45 = vadd.f32 %v1538_v55, %v1537_v9 }
 0x24b   : > { %v2077_v13 = vsel %vm2076_vm6, %v3791_v19, %v2075_v21  ;;  %v1549_v59 = vadd.f32 %v1548_v28, %v1547_v30  ;;  %v1560_v14 = vrot.slane %v1559_v5, 2  ;;  %v1570_v51 = vrot.slane %v3795_v23, 4  ;;  %v2483_v63 = vpop.eup %2482 }
 0x24c   : > { %v1582_v29 = vrot.slane %v3756_v58, 4  ;;  %v2066_v17 = vsel %vm2064_vm7, %v2065_v4, %v2063_v3  ;;  %v2080_v54 = vsel %vm2078_vm8, %v2079_v34, %v2077_v13  ;;  %v1594_v33 = vrot.slane %v3763_v24, 4 }
 0x24d   : > { %v1606_v36 = vrot.slane %v3779_v60, 4  ;;  %v2485_v9 = vpop.eup %2484  ;;  %v2105_v18 = vmul.f32 %v2483_v63, %v2038_v62  ;;  %v1561_v55 = vadd.f32 %v1560_v14, %v1559_v5  ;;  %v1571_v30 = vadd.f32 %v1570_v51, %v3795_v23 }
 0x24e   : > { %v1583_v28 = vadd.f32 %v1582_v29, %v3756_v58  ;;  %v2487_v37 = vpop.eup %2486  ;;  %v2109_v2 = vmul.f32 %v2485_v9, %v2052_v61  ;;  %v1595_v19 = vadd.f32 %v1594_v33, %v3763_v24  ;;  %v1618_v44 = vrot.slane %v3798_v31, 4 }
 0x24f   : > { %v1607_v4 = vadd.f32 %v1606_v36, %v3779_v60  ;;  %v2489_v35 = vpop.eup %2488  ;;  %v2113_v22 = vmul.f32 %v2487_v37, %v2066_v17  ;;  %v2120_v23 = vmul.f32 %v2105_v18, %v3728_v25  ;;  %v1550_v58 = vrot.slane %v1549_v59, 1 }
 0x250   : > { %v1572_v5 = vrot.slane %v1571_v30, 2  ;;  %v2117_v7 = vmul.f32 %v2489_v35, %v2080_v54  ;;  %v2122_v21 = vmul.f32 %v2109_v2, %v3730_v26  ;;  %v1584_v34 = vrot.slane %v1583_v28, 2 }
 0x251   : > { %v1596_v62 = vrot.slane %v1595_v19, 2  ;;  %v2124_v24 = vmul.f32 %v2113_v22, %v3732_v40  ;;  %2128 = vst [vmem:[%s3874_s26] sm:$0xff] %v2120_v23  ;;  %v1562_v60 = vrot.slane %v1561_v55, 1  ;;  %v1608_v61 = vrot.slane %v1607_v4, 2 }
 0x252   : > { %v1573_v3 = vadd.f32 %v1572_v5, %v1571_v30  ;;  %v2126_v13 = vmul.f32 %v2117_v7, %v3734_v27  ;;  %2130 = vst [vmem:[%s3874_s26 + $0x10] sm:$0xff] %v2122_v21  ;;  %v1585_v14 = vadd.f32 %v1584_v34, %v1583_v28  ;;  %v1619_v51 = vadd.f32 %v1618_v44, %v3798_v31  ;;  %v4192_v34 = vld [vmem:[#allocation50_spill] sm:$0xff] }
 0x253   : > { %v1597_v25 = vadd.f32 %v1596_v62, %v1595_v19  ;;  %2132 = vst [vmem:[%s3874_s26 + $0x20] sm:$0xff] %v2124_v24  ;;  %v1609_v63 = vadd.f32 %v1608_v61, %v1607_v4  ;;  %v1630_v26 = vrot.slane %v3766_v43, 4  ;;  %v1642_v17 = vrot.slane %v3771_v0, 4 }
 0x254   : > { %v1574_v29 = vrot.slane %v1573_v3, 1  ;;  %2134 = vst [vmem:[%s3874_s26 + $0x30] sm:$0xff] %v2126_v13  ;;  %v1586_v40 = vrot.slane %v1585_v14, 1  ;;  %v1620_v33 = vrot.slane %v1619_v51, 2  ;;  %v1654_v36 = vrot.slane %v3783_v38, 4 }
 0x255   : > { %v1598_v54 = vrot.slane %v1597_v25, 1  ;;  %v1527_v27 = vadd.f32 %v1526_v16, %v3829_v47  ;;  %v1610_v9 = vrot.slane %v1609_v63, 1  ;;  %v1631_v18 = vadd.f32 %v1630_v26, %v3766_v43 }
 0x256   : > { %v1643_v31 = vadd.f32 %v1642_v17, %v3771_v0  ;;  %v1551_v30 = vadd.f32 %v1550_v58, %v1549_v59  ;;  %v1563_v28 = vadd.f32 %v1562_v60, %v1561_v55  ;;  %v1621_v37 = vadd.f32 %v1620_v33, %v1619_v51  ;;  %v4190_v59 = vld [vmem:[#allocation33_spill] sm:$0xff]  ;;  %v4191_v58 = vld [vmem:[#allocation40_spill] sm:$0xff]  ;;  %v4194_v51 = vld [vmem:[#allocation34_spill] sm:$0xff] }
 0x257   : > { %v1655_v2 = vadd.f32 %v1654_v36, %v3783_v38  ;;  %v1575_v19 = vadd.f32 %v1574_v29, %v1573_v3  ;;  %v1632_v4 = vrot.slane %v1631_v18, 2  ;;  %v1666_v35 = vrot.slane %v3801_v39, 4  ;;  %v4195_v29 = vld [vmem:[#allocation41_spill] sm:$0xff]  ;;  %v4197_v33 = vld [vmem:[#allocation35_spill] sm:$0xff]  ;;  %v4198_v36 = vld [vmem:[#allocation42_spill] sm:$0xff] }
 0x258   : > { %v1644_v44 = vrot.slane %v1643_v31, 2  ;;  %v1587_v22 = vadd.f32 %v1586_v40, %v1585_v14  ;;  %v1599_v23 = vadd.f32 %v1598_v54, %v1597_v25  ;;  %v1622_v5 = vrot.slane %v1621_v37, 1  ;;  %v4193_v14 = vld [vmem:[#allocation54_spill] sm:$0xff]  ;;  %v4196_v40 = vld [vmem:[#allocation52_spill] sm:$0xff] }
 0x259   : > { %v1656_v7 = vrot.slane %v1655_v2, 2  ;;  %v1611_v47 = vadd.f32 %v1610_v9, %v1609_v63  ;;  %v1633_v16 = vadd.f32 %v1632_v4, %v1631_v18  ;;  %v1667_v43 = vadd.f32 %v1666_v35, %v3801_v39 }
 0x25a   : > { %v1645_v21 = vadd.f32 %v1644_v44, %v1643_v31  ;;  %v1673_v55 = vadd.f32 %v3841_v56, %v4190_v59  ;;  %v1675_v38 = vadd.f32 %v3848_v1, %v4191_v58  ;;  %v1677_v62 = vadd.f32 %v3856_v57, %v4192_v34 }
 0x25b   : > { %v1657_v0 = vadd.f32 %v1656_v7, %v1655_v2  ;;  %v1623_v24 = vadd.f32 %v1622_v5, %v1621_v37  ;;  %v1634_v60 = vrot.slane %v1633_v16, 1  ;;  %v1668_v61 = vrot.slane %v1667_v43, 2  ;;  %v4199_v37 = vld [vmem:[#allocation57_spill] sm:$0xff]  ;;  %v4203_v7 = vld [vmem:[#allocation56_spill] sm:$0xff] }
 0x25c   : > { %v1646_v3 = vrot.slane %v1645_v21, 1  ;;  %v1679_v25 = vadd.f32 %v1527_v27, %v4193_v14  ;;  %v1681_v39 = vadd.f32 %v3858_v45, %v4194_v51  ;;  %v1683_v63 = vadd.f32 %v1551_v30, %v4195_v29  ;;  %v4200_v27 = vld [vmem:[#allocation58_spill] sm:$0xff]  ;;  %v4201_v45 = vld [vmem:[#allocation55_spill] sm:$0xff]  ;;  %v4202_v30 = vld [vmem:[#allocation53_spill] sm:$0xff] }
 0x25d   : > { %v1658_v13 = vrot.slane %v1657_v0, 1  ;;  %v1635_v26 = vadd.f32 %v1634_v60, %v1633_v16  ;;  %v1669_v17 = vadd.f32 %v1668_v61, %v1667_v43  ;;  %v1685_v1 = vadd.f32 %v1563_v28, %v4196_v40  ;;  %v4204_v43 = vld [vmem:[#allocation59_spill] sm:$0xff]  ;;  %v4205_v60 = vld [vmem:[#allocation60_spill] sm:$0xff] }
 0x25e   : > { %v1647_v56 = vadd.f32 %v1646_v3, %v1645_v21  ;;  %v1689_v57 = vadd.f32 %v1587_v22, %v4197_v33  ;;  %v1691_v9 = vadd.f32 %v1599_v23, %v4198_v36  ;;  %v1705_v18 = vadd.f32 0.0001, %v1673_v55 }
 0x25f   : > { %v1659_v54 = vadd.f32 %v1658_v13, %v1657_v0  ;;  %v1670_v31 = vrot.slane %v1669_v17, 1  ;;  %v1697_v2 = vadd.f32 %v1635_v26, %v4199_v37  ;;  %v1707_v44 = vadd.f32 0.0001, %v1675_v38 }
 0x260   : > { %v1699_v4 = vadd.f32 %v1647_v56, %v4200_v27  ;;  %v1687_v35 = vadd.f32 %v1575_v19, %v4201_v45  ;;  %v1693_v5 = vadd.f32 %v1611_v47, %v4202_v30  ;;  %v1695_v16 = vadd.f32 %v1623_v24, %v4203_v7 }
 0x261   : > { %v1713_v21 = vadd.f32 0.0001, %v1681_v39  ;;  %v1671_v28 = vadd.f32 %v1670_v31, %v1669_v17  ;;  %v1701_v0 = vadd.f32 %v1659_v54, %v4204_v43  ;;  %v1709_v22 = vadd.f32 0.0001, %v1677_v62 }
 0x262   : > { %v1715_v59 = vadd.f32 0.0001, %v1683_v63  ;;  %v1711_v23 = vadd.f32 0.0001, %v1679_v25  ;;  %v1721_v55 = vadd.f32 0.0001, %v1689_v57  ;;  %v1739_v34 = vmax.f32 %v1705_v18, %v1707_v44 }
 0x263   : > { %v1723_v58 = vadd.f32 0.0001, %v1691_v9  ;;  %v1703_v3 = vadd.f32 %v1671_v28, %v4205_v60  ;;  %v1717_v61 = vadd.f32 0.0001, %v1685_v1  ;;  %v1729_v38 = vadd.f32 0.0001, %v1697_v2 }
 0x264   : > { %v1731_v13 = vadd.f32 0.0001, %v1699_v4  ;;  %v1725_v19 = vadd.f32 0.0001, %v1693_v5  ;;  %v1740_v14 = vmax.f32 %v1739_v34, %v1709_v22  ;;  %v1745_v47 = vmax.f32 %v1713_v21, %v1715_v59 }
 0x265   : > { %v1751_v51 = vmax.f32 %v1721_v55, %v1723_v58  ;;  %v1719_v24 = vadd.f32 0.0001, %v1687_v35  ;;  %v1733_v39 = vadd.f32 0.0001, %v1701_v0  ;;  %v1727_v26 = vadd.f32 0.0001, %v1695_v16 }
 0x266   : > { %v1757_v29 = vmax.f32 %v1729_v38, %v1731_v13  ;;  %v1741_v56 = vmax.f32 %v1740_v14, %v1711_v23  ;;  %v1746_v62 = vmax.f32 %v1745_v47, %v1717_v61  ;;  %v1735_v25 = vadd.f32 0.0001, %v1703_v3 }
 0x267   : > { %v1752_v63 = vmax.f32 %v1751_v51, %v1725_v19 }
 0x268   : > { %v1758_v17 = vmax.f32 %v1757_v29, %v1733_v39  ;;  %v1747_v40 = vmax.f32 %v1746_v62, %v1719_v24  ;;  %v1761_v33 = vsub.f32 %v1705_v18, %v1741_v56  ;;  %v1763_v57 = vsub.f32 %v1707_v44, %v1741_v56 }
 0x269   : > { %v1753_v54 = vmax.f32 %v1752_v63, %v1727_v26  ;;  %v1765_v36 = vsub.f32 %v1709_v22, %v1741_v56  ;;  %v1767_v9 = vsub.f32 %v1711_v23, %v1741_v56 }
 0x26a   : > { %v1759_v1 = vmax.f32 %v1758_v17, %v1735_v25  ;;  %v1769_v31 = vsub.f32 %v1713_v21, %v1747_v40  ;;  %v1771_v37 = vsub.f32 %v1715_v59, %v1747_v40  ;;  %v1773_v2 = vsub.f32 %v1717_v61, %v1747_v40 }
 0x26b   : > { %v1775_v27 = vsub.f32 %v1719_v24, %v1747_v40  ;;  %v1777_v4 = vsub.f32 %v1721_v55, %v1753_v54  ;;  %v1779_v45 = vsub.f32 %v1723_v58, %v1753_v54  ;;  %v1781_v35 = vsub.f32 %v1725_v19, %v1753_v54 }
 0x26c   : > { %v1783_v30 = vsub.f32 %v1727_v26, %v1753_v54  ;;  %v1785_v5 = vsub.f32 %v1729_v38, %v1759_v1  ;;  %v1787_v7 = vsub.f32 %v1731_v13, %v1759_v1  ;;  %v1789_v16 = vsub.f32 %v1733_v39, %v1759_v1 }
 0x26d   : > { %v1791_v28 = vsub.f32 %v1735_v25, %v1759_v1  ;;  %v1794_v43 = vmul.f32 1.442695, %v1761_v33  ;;  %v1798_v0 = vmul.f32 1.442695, %v1763_v57  ;;  %v1802_v34 = vmul.f32 1.442695, %v1765_v36 }
 0x26e   : > { %v1806_v18 = vmul.f32 1.442695, %v1767_v9  ;;  %v1810_v44 = vmul.f32 1.442695, %v1769_v31  ;;  %v1814_v22 = vmul.f32 1.442695, %v1771_v37 }
 0x26f   : > { %2490 = vpow2.f32 %v1794_v43  ;;  %v1818_v21 = vmul.f32 1.442695, %v1773_v2  ;;  %v1822_v59 = vmul.f32 1.442695, %v1775_v27  ;;  %v1826_v23 = vmul.f32 1.442695, %v1777_v4 }
 0x270   : > { %2492 = vpow2.f32 %v1798_v0  ;;  %v1830_v55 = vmul.f32 1.442695, %v1779_v45  ;;  %v1834_v58 = vmul.f32 1.442695, %v1781_v35  ;;  %v1838_v60 = vmul.f32 1.442695, %v1783_v30 }
 0x271   : > { %2494 = vpow2.f32 %v1802_v34  ;;  %v1842_v3 = vmul.f32 1.442695, %v1785_v5  ;;  %v1846_v61 = vmul.f32 1.442695, %v1787_v7  ;;  %v1850_v19 = vmul.f32 1.442695, %v1789_v16 }
 0x272   : > { %2496 = vpow2.f32 %v1806_v18  ;;  %v1854_v24 = vmul.f32 1.442695, %v1791_v28 }
 0x273   : > { %2498 = vpow2.f32 %v1810_v44 }
 0x274   : > { %2500 = vpow2.f32 %v1814_v22 }
 0x275   : > { %2502 = vpow2.f32 %v1818_v21 }
 0x276   : > { %2504 = vpow2.f32 %v1822_v59 }
 0x277   : > { %2506 = vpow2.f32 %v1826_v23 }
 0x278   : > { %2508 = vpow2.f32 %v1830_v55 }
 0x279   : > { %v2491_v38 = vpop.eup %2490  ;;  %2510 = vpow2.f32 %v1834_v58 }
 0x27a   : > { %v2493_v13 = vpop.eup %2492  ;;  %2512 = vpow2.f32 %v1838_v60 }
 0x27b   : > { %v2495_v14 = vpop.eup %2494  ;;  %2514 = vpow2.f32 %v1842_v3  ;;  %v1859_v47 = vadd.f32 %v2493_v13, %v2491_v38 }
 0x27c   : > { %v2497_v51 = vpop.eup %2496  ;;  %2516 = vpow2.f32 %v1846_v61 }
 0x27d   : > { %v2499_v39 = vpop.eup %2498  ;;  %v1860_v29 = vadd.f32 %v2495_v14, %v1859_v47  ;;  %2518 = vpow2.f32 %v1850_v19 }
 0x27e   : > { %v2501_v26 = vpop.eup %2500  ;;  %2520 = vpow2.f32 %v1854_v24 }
 0x27f   : > { %v2503_v56 = vpop.eup %2502  ;;  %v1861_v62 = vadd.f32 %v2497_v51, %v1860_v29  ;;  %v1865_v63 = vadd.f32 %v2501_v26, %v2499_v39 }
 0x280   : > { %v2505_v25 = vpop.eup %2504 }
 0x281   : > { %v2507_v17 = vpop.eup %2506  ;;  %v1866_v40 = vadd.f32 %v2503_v56, %v1865_v63  ;;  %2522 = vrcp.f32 %v1861_v62 }
 0x282   : > { %v2509_v54 = vpop.eup %2508 }
 0x283   : > { %v2511_v33 = vpop.eup %2510  ;;  %v1867_v57 = vadd.f32 %v2505_v25, %v1866_v40  ;;  %v1871_v1 = vadd.f32 %v2509_v54, %v2507_v17 }
 0x284   : > { %v2513_v36 = vpop.eup %2512 }
 0x285   : > { %v2515_v9 = vpop.eup %2514  ;;  %v1872_v31 = vadd.f32 %v2511_v33, %v1871_v1  ;;  %2524 = vrcp.f32 %v1867_v57 }
 0x286   : > { %v2517_v37 = vpop.eup %2516 }
 0x287   : > { %v1873_v2 = vadd.f32 %v2513_v36, %v1872_v31  ;;  %v1877_v27 = vadd.f32 %v2517_v37, %v2515_v9  ;;  %v2519_v4 = vpop.eup %2518 }
 0x288   : > { %v2521_v35 = vpop.eup %2520 }
 0x289   : > { %v1878_v45 = vadd.f32 %v2519_v4, %v1877_v27  ;;  %2526 = vrcp.f32 %v1873_v2 }
 0x28b   : > { %v2523_v30 = vpop.eup %2522  ;;  %v1879_v5 = vadd.f32 %v2521_v35, %v1878_v45 }
 0x28c   : > { %v1883_v7 = vmul.f32 %v2523_v30, %v2491_v38  ;;  %v1885_v16 = vmul.f32 %v2523_v30, %v2493_v13  ;;  %v1887_v28 = vmul.f32 %v2523_v30, %v2495_v14  ;;  %v1889_v43 = vmul.f32 %v2523_v30, %v2497_v51 }
 0x28d   : > { %2528 = vrcp.f32 %v1879_v5 }
 0x28e   : > { %v1921_v0 = vmul.f32 %v1883_v7, %v4178_v15  ;;  %v1923_v34 = vmul.f32 %v1885_v16, %v4181_v50  ;;  %v1925_v18 = vmul.f32 %v1887_v28, %v4184_v53  ;;  %v1927_v44 = vmul.f32 %v1889_v43, %v4187_v11 }
 0x28f   : > { %v2525_v22 = vpop.eup %2524 }
 0x290   : > { %v1893_v21 = vmul.f32 %v2525_v22, %v2499_v39  ;;  %v1895_v59 = vmul.f32 %v2525_v22, %v2501_v26  ;;  %v1897_v23 = vmul.f32 %v2525_v22, %v2503_v56  ;;  %v1899_v55 = vmul.f32 %v2525_v22, %v2505_v25 }
 0x292   : > { %v1929_v58 = vmul.f32 %v1893_v21, %v4179_v42  ;;  %v1931_v60 = vmul.f32 %v1895_v59, %v4182_v20  ;;  %v1933_v3 = vmul.f32 %v1897_v23, %v4185_v6  ;;  %v1935_v61 = vmul.f32 %v1899_v55, %v4188_v49 }
 0x293   : > { %v2527_v15 = vpop.eup %2526 }
 0x294   : > { %v1903_v38 = vmul.f32 %v2527_v15, %v2507_v17  ;;  %v1905_v50 = vmul.f32 %v2527_v15, %v2509_v54  ;;  %v1907_v13 = vmul.f32 %v2527_v15, %v2511_v33  ;;  %v1909_v53 = vmul.f32 %v2527_v15, %v2513_v36 }
 0x295   : > { %v1955_v19 = vadd.f32 %v1929_v58, %v1921_v0  ;;  %v1961_v11 = vadd.f32 %v1931_v60, %v1923_v34  ;;  %v1967_v14 = vadd.f32 %v1933_v3, %v1925_v18  ;;  %v1973_v47 = vadd.f32 %v1935_v61, %v1927_v44 }
 0x296   : > { %v1937_v51 = vmul.f32 %v1903_v38, %v4180_v46  ;;  %v1939_v24 = vmul.f32 %v1905_v50, %v4183_v10  ;;  %v1941_v42 = vmul.f32 %v1907_v13, %v4186_v52  ;;  %v1943_v20 = vmul.f32 %v1909_v53, %v4189_v41 }
 0x297   : > { %v2529_v6 = vpop.eup %2528 }
 0x298   : > { %v1913_v39 = vmul.f32 %v2529_v6, %v2515_v9  ;;  %v1915_v49 = vmul.f32 %v2529_v6, %v2517_v37  ;;  %v1917_v29 = vmul.f32 %v2529_v6, %v2519_v4  ;;  %v1919_v26 = vmul.f32 %v2529_v6, %v2521_v35 }
 0x299   : > { %v1956_v56 = vadd.f32 %v1955_v19, %v1937_v51  ;;  %v1962_v62 = vadd.f32 %v1961_v11, %v1939_v24  ;;  %v1968_v63 = vadd.f32 %v1967_v14, %v1941_v42  ;;  %v1974_v25 = vadd.f32 %v1973_v47, %v1943_v20 }
 0x29a   : > { %v1945_v17 = vmul.f32 %v1913_v39, %v4167_v8  ;;  %v1947_v40 = vmul.f32 %v1915_v49, %v4168_v48  ;;  %v1949_v46 = vmul.f32 %v1917_v29, %v4169_v12  ;;  %v1951_v10 = vmul.f32 %v1919_v26, %v4170_v32 }
 0x29c   : > { %v3933_v52 = vadd.f32 %v1956_v56, %v1945_v17  ;;  %v3935_v41 = vadd.f32 %v1962_v62, %v1947_v40  ;;  %v3937_v54 = vadd.f32 %v1968_v63, %v1949_v46  ;;  %v3939_v33 = vadd.f32 %v1974_v25, %v1951_v10 }
 0x29e   : > { %v1977_v57 = vmul.f32 %v3933_v52, %v3933_v52  ;;  %v1979_v8 = vmul.f32 %v3935_v41, %v3935_v41  ;;  %v1981_v48 = vmul.f32 %v3937_v54, %v3937_v54  ;;  %v1983_v12 = vmul.f32 %v3939_v33, %v3939_v33 }
 0x2a0   : > { %v1990_v32 = vrot.slane %v1977_v57, 4  ;;  %v2002_v1 = vrot.slane %v1979_v8, 4  ;;  %v2014_v36 = vrot.slane %v1981_v48, 4  ;;  %v2026_v9 = vrot.slane %v1983_v12, 4 }
 0x2a2   : > { %v1991_v31 = vadd.f32 %v1990_v32, %v1977_v57  ;;  %v2003_v37 = vadd.f32 %v2002_v1, %v1979_v8  ;;  %v2015_v2 = vadd.f32 %v2014_v36, %v1981_v48  ;;  %v2027_v27 = vadd.f32 %v2026_v9, %v1983_v12 }
 0x2a4   : > { %v1992_v4 = vrot.slane %v1991_v31, 2  ;;  %v2004_v45 = vrot.slane %v2003_v37, 2  ;;  %v2016_v35 = vrot.slane %v2015_v2, 2  ;;  %v2028_v30 = vrot.slane %v2027_v27, 2 }
 0x2a6   : > { %v1993_v5 = vadd.f32 %v1992_v4, %v1991_v31  ;;  %v2005_v7 = vadd.f32 %v2004_v45, %v2003_v37  ;;  %v2017_v16 = vadd.f32 %v2016_v35, %v2015_v2  ;;  %v2029_v28 = vadd.f32 %v2028_v30, %v2027_v27 }
 0x2a8   : > { %v1994_v43 = vrot.slane %v1993_v5, 1  ;;  %v2006_v0 = vrot.slane %v2005_v7, 1  ;;  %v2018_v34 = vrot.slane %v2017_v16, 1  ;;  %v2030_v18 = vrot.slane %v2029_v28, 1 }
 0x2aa   : > { %v1995_v44 = vadd.f32 %v1994_v43, %v1993_v5  ;;  %v2007_v22 = vadd.f32 %v2006_v0, %v2005_v7  ;;  %v2019_v21 = vadd.f32 %v2018_v34, %v2017_v16  ;;  %v2031_v59 = vadd.f32 %v2030_v18, %v2029_v28 }
 0x2ac   : > { %2530 = vrsqrt.f32 %v1995_v44  ;;  %v2089_v23 = vadd.f32 1.0, %v1995_v44  ;;  %v2091_v55 = vadd.f32 1.0, %v2007_v22  ;;  %v2093_v58 = vadd.f32 1.0, %v2019_v21 }
 0x2ad   : > { %2532 = vrsqrt.f32 %v2007_v22  ;;  %v2095_v60 = vadd.f32 1.0, %v2031_v59  ;;  %vm2041_vm9 = vcmp.eq.f32.partialorder %v1995_v44, inf  ;;  %vm2055_vm10 = vcmp.eq.f32.partialorder %v2007_v22, inf }
 0x2ae   : > { %2534 = vrsqrt.f32 %v2019_v21  ;;  %v2097_v3 = vadd.f32 0.0001, %v2089_v23  ;;  %v2099_v61 = vadd.f32 0.0001, %v2091_v55  ;;  %v2101_v15 = vadd.f32 0.0001, %v2093_v58 }
 0x2af   : > { %2536 = vrsqrt.f32 %v2031_v59  ;;  %v2103_v38 = vadd.f32 0.0001, %v2095_v60  ;;  %v2044_v24 = vand.u32 2147483648, %v1995_v44  ;;  %vm2069_vm11 = vcmp.eq.f32.partialorder %v2019_v21, inf }
 0x2b0   : > { %2538 = vrcp.f32 %v2097_v3  ;;  %vm2043_vm12 = vcmp.eq.f32.partialorder %v1995_v44, 0.0  ;;  %v2058_v6 = vand.u32 2147483648, %v2007_v22  ;;  %vm2083_vm13 = vcmp.eq.f32.partialorder %v2031_v59, inf }
 0x2b1   : > { %2540 = vrcp.f32 %v2099_v61  ;;  %vm2057_vm14 = vcmp.eq.f32.partialorder %v2007_v22, 0.0  ;;  %v2072_v29 = vand.u32 2147483648, %v2019_v21  ;;  %vm2071_vm15 = vcmp.eq.f32.partialorder %v2019_v21, 0.0 }
 0x2b2   : > { %2542 = vrcp.f32 %v2101_v15  ;;  %v2086_v62 = vand.u32 2147483648, %v2031_v59  ;;  %vm2085_vm0 = vcmp.eq.f32.partialorder %v2031_v59, 0.0 }
 0x2b3   : > { %2544 = vrcp.f32 %v2103_v38 }
 0x2b6   : > { %v2531_v50 = vpop.eup %2530 }
 0x2b7   : > { %v2533_v13 = vpop.eup %2532  ;;  %v2040_v53 = vmul.f32 %v2531_v50, %v1995_v44 }
 0x2b8   : > { %v2535_v19 = vpop.eup %2534  ;;  %v2054_v11 = vmul.f32 %v2533_v13, %v2007_v22 }
 0x2b9   : > { %v2537_v14 = vpop.eup %2536  ;;  %v2042_v47 = vsel %vm2041_vm9, %v1995_v44, %v2040_v53  ;;  %v2068_v51 = vmul.f32 %v2535_v19, %v2019_v21 }
 0x2ba   : > { %v2056_v42 = vsel %vm2055_vm10, %v2007_v22, %v2054_v11  ;;  %v2082_v20 = vmul.f32 %v2537_v14, %v2031_v59  ;;  %v2045_v49 = vsel %vm2043_vm12, %v2044_v24, %v2042_v47  ;;  %v2539_v63 = vpop.eup %2538 }
 0x2bb   : > { %v2070_v39 = vsel %vm2069_vm11, %v2019_v21, %v2068_v51  ;;  %v2059_v56 = vsel %vm2057_vm14, %v2058_v6, %v2056_v42  ;;  %v2541_v17 = vpop.eup %2540  ;;  %v2107_v46 = vmul.f32 %v2539_v63, %v2045_v49 }
 0x2bc   : > { %v2084_v26 = vsel %vm2083_vm13, %v2031_v59, %v2082_v20  ;;  %v2073_v25 = vsel %vm2071_vm15, %v2072_v29, %v2070_v39  ;;  %v2543_v10 = vpop.eup %2542  ;;  %v2111_v57 = vmul.f32 %v2541_v17, %v2059_v56 }
 0x2bd   : > { %v2087_v40 = vsel %vm2085_vm0, %v2086_v62, %v2084_v26  ;;  %v2545_v8 = vpop.eup %2544  ;;  %v2115_v48 = vmul.f32 %v2543_v10, %v2073_v25  ;;  %v2121_v12 = vmul.f32 %v2107_v46, %v3933_v52 }
 0x2be   : > { %v2119_v32 = vmul.f32 %v2545_v8, %v2087_v40  ;;  %v2123_v1 = vmul.f32 %v2111_v57, %v3935_v41 }
 0x2bf   : > { %v2125_v36 = vmul.f32 %v2115_v48, %v3937_v54  ;;  %2129 = vst [vmem:[%s3874_s26 + $0x8] sm:$0xff] %v2121_v12 }
 0x2c0   : > { %v2127_v9 = vmul.f32 %v2119_v32, %v3939_v33  ;;  %2131 = vst [vmem:[%s3874_s26 + $0x18] sm:$0xff] %v2123_v1 }
 0x2c1   : > { %2133 = vst [vmem:[%s3874_s26 + $0x28] sm:$0xff] %v2125_v36 }
 0x2c2   : > { %2135 = vst [vmem:[%s3874_s26 + $0x38] sm:$0xff] %v2127_v9 }
 0x2c3 PF: > { %s12_s9 = sadd.s32 1, %s2552_s9  }
 0x2c4   : > { %p9_p4 = scmp.ge.s32.totalorder %s12_s9, 4  }
 0x2c6   :  { %11 = sbr.rel (!%p9_p4) target bundleno = 1 (0x1), region = 61 }

</bundles_post_ra>
